<compile_context>
chip_gen: v6e
topology: v6e:2x2x1
jax: 0.10.0
libtpu: 0.0.40
codegen_flags: <defaults>
</compile_context>

<pallas_src>
import functools

import numpy as np
import jax
import jax.numpy as jnp
from jax import lax
from jax.experimental import pallas as pl
from jax.experimental.pallas import tpu as pltpu

_BN_EPS = 1e-5
_MXU_DTYPE = jnp.bfloat16            # MXU operands; accumulation stays f32
_VMEM_LIMIT = 48 * 1024 * 1024       # below v7x's 64 MiB physical, above v5e's 16 MiB scoped default


def _round_up(x, m):
    return ((x + m - 1) // m) * m


def _pick_row_tile(m, tm_req, min_steps=2):
    """Largest row tile (multiple of 16) that still leaves >= 2 grid steps
    (v7x has two TensorCores) whenever the problem allows it."""
    tm = min(tm_req, _round_up(m, 16))
    if m > 16 and _round_up(m, tm) // tm < min_steps:
        tm = max(16, _round_up((m + min_steps - 1) // min_steps, 16))
    return tm


def bn_scale_bias(bn):
    """Inference-mode BatchNorm folded to per-channel scale / bias."""
    scale = bn["gamma"] / jnp.sqrt(bn["var"] + _BN_EPS)
    bias = bn["beta"] - bn["mean"] * scale
    return scale, bias


# ---------------------------------------------------------------------------
# Kernel 1: fused im2col matmul with per-channel epilogue (PReLU or affine/BN)
# ---------------------------------------------------------------------------
def _matmul_prelu_kernel(x_ref, w_ref, alpha_ref, o_ref):
    acc = jnp.dot(x_ref[...], w_ref[...], preferred_element_type=jnp.float32)
    o_ref[...] = jnp.where(acc > 0, acc, acc * alpha_ref[...]).astype(o_ref.dtype)


def _matmul_affine_kernel(x_ref, w_ref, scale_ref, bias_ref, o_ref):
    acc = jnp.dot(x_ref[...], w_ref[...], preferred_element_type=jnp.float32)
    o_ref[...] = (acc * scale_ref[...] + bias_ref[...]).astype(o_ref.dtype)


def matmul_fused(xk, w, vecs, *, epilogue, out_dtype=_MXU_DTYPE, tm=512):
    """(M, K) @ (K, Cout) with a fused per-channel epilogue.

    epilogue == "prelu":  vecs = [alpha]        -> PReLU(acc)
    epilogue == "affine": vecs = [scale, bias]  -> acc*scale + bias

    K carries the full folded 3x3xCin (im2col) contraction so each row tile is
    one MXU pass; the weights / epilogue vectors use constant index_maps and
    are DMA'd only once.
    """
    m, k = xk.shape
    cout = w.shape[-1]
    tm = _pick_row_tile(m, tm)
    m_pad = _round_up(m, tm)
    xk = xk.astype(_MXU_DTYPE)
    if m_pad != m:
        xk = jnp.pad(xk, ((0, m_pad - m), (0, 0)))

    kernel = _matmul_prelu_kernel if epilogue == "prelu" else _matmul_affine_kernel
    in_specs = [pl.BlockSpec((tm, k), lambda i: (i, 0)),
                pl.BlockSpec((k, cout), lambda i: (0, 0))]
    in_specs += [pl.BlockSpec((1, cout), lambda i: (0, 0)) for _ in vecs]

    out_size = jnp.dtype(out_dtype).itemsize
    cost = pl.CostEstimate(
        flops=int(2 * m_pad * k * cout),
        transcendentals=0,
        bytes_accessed=int(2 * (m_pad * k + k * cout) + out_size * m_pad * cout))

    out = pl.pallas_call(
        kernel,
        out_shape=jax.ShapeDtypeStruct((m_pad, cout), out_dtype),
        grid_spec=pltpu.PrefetchScalarGridSpec(
            num_scalar_prefetch=0,
            grid=(m_pad // tm,),
            in_specs=in_specs,
            out_specs=pl.BlockSpec((tm, cout), lambda i: (i, 0)),
        ),
        compiler_params=pltpu.CompilerParams(
            dimension_semantics=("parallel",),
            vmem_limit_bytes=_VMEM_LIMIT),
        cost_estimate=cost,
    )(xk, w.astype(_MXU_DTYPE),
      *[v.reshape(1, cout).astype(jnp.float32) for v in vecs])
    return out[:m]


def _im2col_3x3(x, *, stride):
    """x: (N, H, W, C), pad=1 -> ((N*Ho*Wo, 9*C) bf16, Ho, Wo); tap-major K."""
    n, h, w, c = x.shape
    ho = (h - 1) // stride + 1
    wo = (w - 1) // stride + 1
    xp = jnp.pad(x.astype(_MXU_DTYPE), ((0, 0), (1, 1), (1, 1), (0, 0)))
    cols = []
    for dy in range(3):
        for dx in range(3):
            t = lax.slice(
                xp,
                (0, dy, dx, 0),
                (n, dy + stride * (ho - 1) + 1, dx + stride * (wo - 1) + 1, c),
                (1, stride, stride, 1),
            )
            cols.append(t.reshape(n * ho * wo, c))
    return jnp.concatenate(cols, axis=-1), ho, wo


# ---------------------------------------------------------------------------
# Kernel 2: SE gate — tiled pooled-sum with pl.when finalize (fc1->ReLU->fc2->sigmoid)
# ---------------------------------------------------------------------------
def _se_gate_kernel(r_ref, w1_ref, w2_ref, g_ref, acc_ref, *, inv_s):
    si = pl.program_id(1)

    @pl.when(si == 0)
    def _():
        acc_ref[...] = jnp.zeros_like(acc_ref)

    acc_ref[...] += jnp.sum(r_ref[0].astype(jnp.float32), axis=0, keepdims=True)

    @pl.when(si == pl.num_programs(1) - 1)
    def _():
        pooled = acc_ref[...] * inv_s                                   # (1, C)
        hdn = jnp.dot(pooled, w1_ref[...], preferred_element_type=jnp.float32)
        hdn = jnp.maximum(hdn, 0.0)
        gt = jnp.dot(hdn, w2_ref[...], preferred_element_type=jnp.float32)
        g_ref[0] = pl.reciprocal(1.0 + jnp.exp(-gt), approx=True)       # sigmoid


def se_gate_pallas(r, w_fc1, w_fc2, *, ts_req=512):
    """r: (N, S, C) -> per-batch SE gate (N, 1, C) f32."""
    n, s, c = r.shape
    cr = w_fc1.shape[-1]
    ts = min(ts_req, _round_up(s, 16))
    s_pad = _round_up(s, ts)
    if s_pad != s:
        r = jnp.pad(r, ((0, 0), (0, s_pad - s), (0, 0)))   # zero rows: sum unaffected
    kernel = functools.partial(_se_gate_kernel, inv_s=1.0 / s)
    return pl.pallas_call(
        kernel,
        out_shape=jax.ShapeDtypeStruct((n, 1, c), jnp.float32),
        grid_spec=pltpu.PrefetchScalarGridSpec(
            num_scalar_prefetch=0,
            grid=(n, s_pad // ts),
            in_specs=[
                pl.BlockSpec((1, ts, c), lambda b, si: (b, si, 0)),
                pl.BlockSpec((c, cr), lambda b, si: (0, 0)),
                pl.BlockSpec((cr, c), lambda b, si: (0, 0)),
            ],
            out_specs=pl.BlockSpec((1, 1, c), lambda b, si: (b, 0, 0)),
            scratch_shapes=[pltpu.VMEM((1, c), jnp.float32)],
        ),
        compiler_params=pltpu.CompilerParams(
            dimension_semantics=("parallel", "arbitrary")),
    )(r, w_fc1.astype(jnp.float32), w_fc2.astype(jnp.float32))


# ---------------------------------------------------------------------------
# Kernel 3: gate-scale + residual add (row-tiled pointwise)
# ---------------------------------------------------------------------------
def _se_scale_residual_kernel(r_ref, g_ref, sc_ref, o_ref):
    o_ref[...] = (r_ref[...].astype(jnp.float32) * g_ref[...].astype(jnp.float32)
                  + sc_ref[...].astype(jnp.float32))


def se_scale_residual_pallas(r, gate, sc, *, ts_req=512):
    """r, sc: (N, S, C); gate: (N, 1, C) -> (N, S, C) f32 = r*gate + sc."""
    n, s, c = r.shape
    ts = min(ts_req, _round_up(s, 16))
    s_pad = _round_up(s, ts)
    if s_pad != s:
        r = jnp.pad(r, ((0, 0), (0, s_pad - s), (0, 0)))
        sc = jnp.pad(sc, ((0, 0), (0, s_pad - s), (0, 0)))
    out = pl.pallas_call(
        _se_scale_residual_kernel,
        out_shape=jax.ShapeDtypeStruct((n, s_pad, c), jnp.float32),
        grid_spec=pltpu.PrefetchScalarGridSpec(
            num_scalar_prefetch=0,
            grid=(n, s_pad // ts),
            in_specs=[
                pl.BlockSpec((1, ts, c), lambda b, si: (b, si, 0)),
                pl.BlockSpec((1, 1, c), lambda b, si: (b, 0, 0)),
                pl.BlockSpec((1, ts, c), lambda b, si: (b, si, 0)),
            ],
            out_specs=pl.BlockSpec((1, ts, c), lambda b, si: (b, si, 0)),
        ),
        compiler_params=pltpu.CompilerParams(
            dimension_semantics=("parallel", "parallel")),
    )(r, gate, sc)
    return out[:, :s, :]


# ---------------------------------------------------------------------------
# bottleneck_IR_SE forward (NHWC)
# ---------------------------------------------------------------------------
def _bottleneck_forward(x, p, *, in_channel, depth, stride):
    n, h, w, cin = x.shape
    s1, b1 = bn_scale_bias(p["bn1"])
    s2, b2 = bn_scale_bias(p["bn2"])

    # ---- conv1 with BN1 fused:  BN1(x) = s1*(x + b1/s1); shift the input,
    #      fold the scale into w1 -> zero-padding stays exact at the borders.
    x_shift = x + b1 / s1
    w1_eff = (p["w1"] * s1[None, None, :, None]).reshape(9 * cin, depth)
    cols1, _, _ = _im2col_3x3(x_shift, stride=1)
    r1 = matmul_fused(cols1, w1_eff, [p["prelu_alpha"]], epilogue="prelu")
    r1 = r1.reshape(n, h, w, depth)

    # ---- conv2 (stride) + BN2 fused epilogue
    cols2, ho, wo = _im2col_3x3(r1, stride=stride)
    r = matmul_fused(cols2, p["w2"].reshape(9 * depth, depth), [s2, b2],
                     epilogue="affine")
    r = r.reshape(n, ho * wo, depth)

    # ---- shortcut branch
    xs = x[:, ::stride, ::stride, :]
    if in_channel == depth:
        # MaxPool2d(kernel_size=1, stride) == pure strided subsample (no compute).
        sc = xs.reshape(n, ho * wo, depth)
    else:
        ssc, bsc = bn_scale_bias(p["bn_sc"])
        sc = matmul_fused(xs.reshape(n * ho * wo, cin), p["w_sc"], [ssc, bsc],
                          epilogue="affine")
        sc = sc.reshape(n, ho * wo, depth)

    # ---- SE gate + per-channel scale + residual add
    gate = se_gate_pallas(r, p["w_fc1"], p["w_fc2"])
    out = se_scale_residual_pallas(r, gate, sc)
    return out.reshape(n, ho, wo, depth)


class BottleneckIRSE:
    def __init__(self, in_channel, depth, stride, params):
        self.in_channel = in_channel
        self.depth = depth
        self.stride = stride
        self.p = params
        self._fwd = jax.jit(functools.partial(
            _bottleneck_forward, in_channel=in_channel, depth=depth,
            stride=stride))

    def __call__(self, x):
        return self._fwd(x, self.p)


# ---------------------------------------------------------------------------
# Parameter init and pure-JAX reference (for verification)
# ---------------------------------------------------------------------------
def init_params(key, in_channel, depth, reduction=16):
    keys = jax.random.split(key, 9)

    def bn_params(k, c):
        k1, k2, k3, k4 = jax.random.split(k, 4)
        return dict(
            gamma=jax.random.uniform(k1, (c,), jnp.float32, 0.5, 1.5),
            beta=0.1 * jax.random.normal(k2, (c,), jnp.float32),
            mean=0.1 * jax.random.normal(k3, (c,), jnp.float32),
            var=jax.random.uniform(k4, (c,), jnp.float32, 0.5, 1.5),
        )

    cr = depth // reduction
    p = dict(
        bn1=bn_params(keys[0], in_channel),
        w1=0.05 * jax.random.normal(keys[1], (3, 3, in_channel, depth), jnp.float32),
        prelu_alpha=jax.random.uniform(keys[2], (depth,), jnp.float32, 0.1, 0.4),
        w2=0.05 * jax.random.normal(keys[3], (3, 3, depth, depth), jnp.float32),
        bn2=bn_params(keys[4], depth),
        w_fc1=0.1 * jax.random.normal(keys[5], (depth, cr), jnp.float32),
        w_fc2=0.1 * jax.random.normal(keys[6], (cr, depth), jnp.float32),
    )
    if in_channel != depth:
        p["w_sc"] = 0.1 * jax.random.normal(keys[7], (in_channel, depth), jnp.float32)
        p["bn_sc"] = bn_params(keys[8], depth)
    return p


def reference_forward(x, p, in_channel, depth, stride):
    def bn(v, b):
        s, t = bn_scale_bias(b)
        return v * s + t

    dn = ("NHWC", "HWIO", "NHWC")
    hi = lax.Precision.HIGHEST
    r = bn(x, p["bn1"])
    r = lax.conv_general_dilated(r, p["w1"], (1, 1), ((1, 1), (1, 1)),
                                 dimension_numbers=dn, precision=hi)
    r = jnp.where(r > 0, r, r * p["prelu_alpha"])
    r = lax.conv_general_dilated(r, p["w2"], (stride, stride), ((1, 1), (1, 1)),
                                 dimension_numbers=dn, precision=hi)
    r = bn(r, p["bn2"])
    pooled = r.mean(axis=(1, 2))
    h = jnp.maximum(jnp.dot(pooled, p["w_fc1"], precision=hi), 0.0)
    g = jax.nn.sigmoid(jnp.dot(h, p["w_fc2"], precision=hi))
    r = r * g[:, None, None, :]
    if in_channel == depth:
        sc = x[:, ::stride, ::stride, :]
    else:
        sc = jnp.einsum("nhwc,cd->nhwd", x[:, ::stride, ::stride, :],
                        p["w_sc"], precision=hi)
        sc = bn(sc, p["bn_sc"])
    return r + sc


if __name__ == "__main__":
    key = jax.random.PRNGKey(0)
    n, h, w = 2, 8, 8
    configs = [
        (64, 64, 1),   # identity shortcut (MaxPool2d(1, 1))
        (64, 64, 2),   # strided MaxPool2d(1, 2) shortcut
        (32, 64, 2),   # 1x1-conv + BN projection shortcut
    ]
    for (cin, depth, stride) in configs:
        key, kp, kx = jax.random.split(key, 3)
        params = init_params(kp, cin, depth)
        x = jax.random.normal(kx, (n, h, w, cin), dtype=jnp.float32)
        block = BottleneckIRSE(cin, depth, stride, params)
        out = jax.block_until_ready(block(x))
        ref = jax.block_until_ready(
            reference_forward(x, params, cin, depth, stride))
        # bf16 MXU operands with f32 accumulation vs. an all-f32 HIGHEST reference.
        np.testing.assert_allclose(np.asarray(out), np.asarray(ref),
                                   rtol=2e-2, atol=2e-2)
    print("KERNEL_OK")
</pallas_src>

<mosaic_0001>
module attributes {stable_mosaic.version = 11 : i64} {
  func.func @_matmul_prelu_kernel(%arg0: i32, %arg1: memref<64x576xbf16, #tpu.memory_space<vmem>>, %arg2: memref<576x64xbf16, #tpu.memory_space<vmem>>, %arg3: memref<1x64xf32, #tpu.memory_space<vmem>>, %arg4: memref<64x64xbf16, #tpu.memory_space<vmem>>) attributes {dimension_semantics = [#tpu.dimension_semantics<parallel>], iteration_bounds = array<i64: 2>, scalar_prefetch = 0 : i64, scratch_operands = 0 : i64, tpu.core_type = #tpu.core_type<tc>, window_params = [{transform_indices = @transform_0, window_bounds = array<i64: 64, 576>}, {pipeline_mode = #tpu.pipeline_mode<synchronous>, transform_indices = @transform_1, window_bounds = array<i64: 576, 64>}, {pipeline_mode = #tpu.pipeline_mode<synchronous>, transform_indices = @transform_2, window_bounds = array<i64: 1, 64>}, {transform_indices = @transform_3, window_bounds = array<i64: 64, 64>}]} {
    %c0 = arith.constant 0 : index
    %c0_0 = arith.constant 0 : index
    %0 = vector.load %arg1[%c0, %c0_0] : memref<64x576xbf16, #tpu.memory_space<vmem>>, vector<64x576xbf16>
    %c0_1 = arith.constant 0 : index
    %c0_2 = arith.constant 0 : index
    %1 = vector.load %arg2[%c0_1, %c0_2] : memref<576x64xbf16, #tpu.memory_space<vmem>>, vector<576x64xbf16>
    %cst = arith.constant dense<0.000000e+00> : vector<64x64xf32>
    %2 = tpu.matmul %0, %1, %cst {dimension_numbers = #tpu.dot_dimension_numbers<[1], [0], [0], [1], [0, 0, 1, 1], [], []>} : vector<64x576xbf16>, vector<576x64xbf16>, vector<64x64xf32> -> vector<64x64xf32>
    %cst_3 = arith.constant 0.000000e+00 : f32
    %3 = vector.broadcast %cst_3 : f32 to vector<64x64xf32>
    %4 = arith.cmpf ogt, %2, %3 : vector<64x64xf32>
    %c0_4 = arith.constant 0 : index
    %c0_5 = arith.constant 0 : index
    %5 = vector.load %arg3[%c0_4, %c0_5] : memref<1x64xf32, #tpu.memory_space<vmem>>, vector<1x64xf32>
    %6 = vector.broadcast %5 : vector<1x64xf32> to vector<64x64xf32>
    %7 = arith.mulf %2, %6 : vector<64x64xf32>
    %8 = arith.select %4, %2, %7 : vector<64x64xi1>, vector<64x64xf32>
    %9 = arith.truncf %8 : vector<64x64xf32> to vector<64x64xbf16>
    %c0_6 = arith.constant 0 : index
    %c0_7 = arith.constant 0 : index
    %10 = vector.load %arg4[%c0_6, %c0_7] : memref<64x64xbf16, #tpu.memory_space<vmem>>, vector<64x64xbf16>
    tpu.vector_store %arg4[%c0_6, %c0_7], %9 {strides = array<i32>} : memref<64x64xbf16, #tpu.memory_space<vmem>>, vector<64x64xbf16>,
    return
  }
  func.func @transform_0(%arg0: i32) -> (i32, i32) {
    %c0_i32 = arith.constant 0 : i32
    %c0_i32_0 = arith.constant 0 : i32
    return %arg0, %c0_i32 : i32, i32
  }
  func.func @transform_1(%arg0: i32) -> (i32, i32) {
    %c0_i32 = arith.constant 0 : i32
    %c0_i32_0 = arith.constant 0 : i32
    %c0_i32_1 = arith.constant 0 : i32
    return %c0_i32, %c0_i32_0 : i32, i32
  }
  func.func @transform_2(%arg0: i32) -> (i32, i32) {
    %c0_i32 = arith.constant 0 : i32
    %c0_i32_0 = arith.constant 0 : i32
    %c0_i32_1 = arith.constant 0 : i32
    return %c0_i32, %c0_i32_0 : i32, i32
  }
  func.func @transform_3(%arg0: i32) -> (i32, i32) {
    %c0_i32 = arith.constant 0 : i32
    %c0_i32_0 = arith.constant 0 : i32
    return %arg0, %c0_i32 : i32, i32
  }
}

module attributes {stable_mosaic.version = 11 : i64} {
  func.func @_se_gate_kernel(%arg0: i32, %arg1: i32, %arg2: memref<1x64x64xbf16, #tpu.memory_space<vmem>>, %arg3: memref<64x4xf32, #tpu.memory_space<vmem>>, %arg4: memref<4x64xf32, #tpu.memory_space<vmem>>, %arg5: memref<1x1x64xf32, #tpu.memory_space<vmem>>, %arg6: memref<1x64xf32, #tpu.memory_space<vmem>>) attributes {dimension_semantics = [#tpu.dimension_semantics<parallel>, #tpu.dimension_semantics<arbitrary>], iteration_bounds = array<i64: 2, 1>, scalar_prefetch = 0 : i64, scratch_operands = 1 : i64, tpu.core_type = #tpu.core_type<tc>, window_params = [{transform_indices = @transform_0, window_bounds = array<i64: 1, 64, 64>}, {pipeline_mode = #tpu.pipeline_mode<synchronous>, transform_indices = @transform_1, window_bounds = array<i64: 64, 4>}, {pipeline_mode = #tpu.pipeline_mode<synchronous>, transform_indices = @transform_2, window_bounds = array<i64: 4, 64>}, {transform_indices = @transform_3, window_bounds = array<i64: 1, 1, 64>}]} {
    %c0_i32 = arith.constant 0 : i32
    %0 = arith.cmpi eq, %arg1, %c0_i32 : i32
    %1 = arith.extui %0 : i1 to i32
    %c0_i32_0 = arith.constant 0 : i32
    %2 = arith.cmpi ne, %1, %c0_i32_0 : i32
    scf.if %2 {
      %cst_9 = arith.constant 0.000000e+00 : f32
      %14 = vector.broadcast %cst_9 : f32 to vector<1x64xf32>
      %c0_10 = arith.constant 0 : index
      %c0_11 = arith.constant 0 : index
      %15 = vector.load %arg6[%c0_10, %c0_11] : memref<1x64xf32, #tpu.memory_space<vmem>>, vector<1x64xf32>
      tpu.vector_store %arg6[%c0_10, %c0_11], %14 {strides = array<i32>} : memref<1x64xf32, #tpu.memory_space<vmem>>, vector<1x64xf32>,
    } else {
    }
    %c0 = arith.constant 0 : index
    %c0_1 = arith.constant 0 : index
    %3 = vector.load %arg6[%c0, %c0_1] : memref<1x64xf32, #tpu.memory_space<vmem>>, vector<1x64xf32>
    %c0_2 = arith.constant 0 : index
    %c0_3 = arith.constant 0 : index
    %c0_4 = arith.constant 0 : index
    %4 = vector.load %arg2[%c0_2, %c0_3, %c0_4] : memref<1x64x64xbf16, #tpu.memory_space<vmem>>, vector<1x64x64xbf16>
    %5 = vector.shape_cast %4 : vector<1x64x64xbf16> to vector<64x64xbf16>
    %6 = arith.extf %5 : vector<64x64xbf16> to vector<64x64xf32>
    %cst = arith.constant dense<0.000000e+00> : vector<64xf32>
    %7 = vector.multi_reduction <add>, %6, %cst [0] : vector<64x64xf32> to vector<64xf32>
    %8 = vector.shape_cast %7 : vector<64xf32> to vector<1x64xf32>
    %9 = arith.addf %3, %8 : vector<1x64xf32>
    %c0_5 = arith.constant 0 : index
    %c0_6 = arith.constant 0 : index
    %10 = vector.load %arg6[%c0_5, %c0_6] : memref<1x64xf32, #tpu.memory_space<vmem>>, vector<1x64xf32>
    tpu.vector_store %arg6[%c0_5, %c0_6], %9 {strides = array<i32>} : memref<1x64xf32, #tpu.memory_space<vmem>>, vector<1x64xf32>,
    %c0_i32_7 = arith.constant 0 : i32
    %11 = arith.cmpi eq, %arg1, %c0_i32_7 : i32
    %12 = arith.extui %11 : i1 to i32
    %c0_i32_8 = arith.constant 0 : i32
    %13 = arith.cmpi ne, %12, %c0_i32_8 : i32
    scf.if %13 {
      %c0_9 = arith.constant 0 : index
      %c0_10 = arith.constant 0 : index
      %14 = vector.load %arg6[%c0_9, %c0_10] : memref<1x64xf32, #tpu.memory_space<vmem>>, vector<1x64xf32>
      %cst_11 = arith.constant 1.562500e-02 : f32
      %15 = vector.broadcast %cst_11 : f32 to vector<1x64xf32>
      %16 = arith.mulf %14, %15 : vector<1x64xf32>
      %c0_12 = arith.constant 0 : index
      %c0_13 = arith.constant 0 : index
      %17 = vector.load %arg3[%c0_12, %c0_13] : memref<64x4xf32, #tpu.memory_space<vmem>>, vector<64x4xf32>
      %cst_14 = arith.constant dense<0.000000e+00> : vector<1x4xf32>
      %18 = tpu.matmul %16, %17, %cst_14 {dimension_numbers = #tpu.dot_dimension_numbers<[1], [0], [0], [1], [0, 0, 1, 1], [], []>} : vector<1x64xf32>, vector<64x4xf32>, vector<1x4xf32> -> vector<1x4xf32>
      %cst_15 = arith.constant 0.000000e+00 : f32
      %19 = vector.broadcast %cst_15 : f32 to vector<1x4xf32>
      %20 = arith.maximumf %18, %19 : vector<1x4xf32>
      %c0_16 = arith.constant 0 : index
      %c0_17 = arith.constant 0 : index
      %21 = vector.load %arg4[%c0_16, %c0_17] : memref<4x64xf32, #tpu.memory_space<vmem>>, vector<4x64xf32>
      %cst_18 = arith.constant dense<0.000000e+00> : vector<1x64xf32>
      %22 = tpu.matmul %20, %21, %cst_18 {dimension_numbers = #tpu.dot_dimension_numbers<[1], [0], [0], [1], [0, 0, 1, 1], [], []>} : vector<1x4xf32>, vector<4x64xf32>, vector<1x64xf32> -> vector<1x64xf32>
      %cst_19 = arith.constant 0.000000e+00 : f32
      %23 = vector.broadcast %cst_19 : f32 to vector<1x64xf32>
      %24 = arith.subf %23, %22 : vector<1x64xf32>
      %25 = math.exp %24 : vector<1x64xf32>
      %cst_20 = arith.constant 1.000000e+00 : f32
      %26 = vector.broadcast %cst_20 : f32 to vector<1x64xf32>
      %27 = arith.addf %26, %25 : vector<1x64xf32>
      %28 = tpu.reciprocal %27 {approx = true} : vector<1x64xf32> -> vector<1x64xf32>
      %c0_21 = arith.constant 0 : index
      %c0_22 = arith.constant 0 : index
      %c0_23 = arith.constant 0 : index
      %29 = vector.load %arg5[%c0_21, %c0_22, %c0_23] : memref<1x1x64xf32, #tpu.memory_space<vmem>>, vector<1x1x64xf32>
      %30 = vector.shape_cast %29 : vector<1x1x64xf32> to vector<1x64xf32>
      %31 = vector.shape_cast %28 : vector<1x64xf32> to vector<1x1x64xf32>
      tpu.vector_store %arg5[%c0_21, %c0_22, %c0_23], %31 {strides = array<i32>} : memref<1x1x64xf32, #tpu.memory_space<vmem>>, vector<1x1x64xf32>,
    } else {
    }
    return
  }
  func.func @transform_0(%arg0: i32, %arg1: i32) -> (i32, i32, i32) {
    %c0_i32 = arith.constant 0 : i32
    %c0_i32_0 = arith.constant 0 : i32
    return %arg0, %arg1, %c0_i32 : i32, i32, i32
  }
  func.func @transform_1(%arg0: i32, %arg1: i32) -> (i32, i32) {
    %c0_i32 = arith.constant 0 : i32
    %c0_i32_0 = arith.constant 0 : i32
    %c0_i32_1 = arith.constant 0 : i32
    return %c0_i32, %c0_i32_0 : i32, i32
  }
  func.func @transform_2(%arg0: i32, %arg1: i32) -> (i32, i32) {
    %c0_i32 = arith.constant 0 : i32
    %c0_i32_0 = arith.constant 0 : i32
    %c0_i32_1 = arith.constant 0 : i32
    return %c0_i32, %c0_i32_0 : i32, i32
  }
  func.func @transform_3(%arg0: i32, %arg1: i32) -> (i32, i32, i32) {
    %c0_i32 = arith.constant 0 : i32
    %c0_i32_0 = arith.constant 0 : i32
    %c0_i32_1 = arith.constant 0 : i32
    return %arg0, %c0_i32, %c0_i32_0 : i32, i32, i32
  }
}

module attributes {stable_mosaic.version = 11 : i64} {
  func.func @_matmul_affine_kernel(%arg0: i32, %arg1: memref<64x576xbf16, #tpu.memory_space<vmem>>, %arg2: memref<576x64xbf16, #tpu.memory_space<vmem>>, %arg3: memref<1x64xf32, #tpu.memory_space<vmem>>, %arg4: memref<1x64xf32, #tpu.memory_space<vmem>>, %arg5: memref<64x64xbf16, #tpu.memory_space<vmem>>) attributes {dimension_semantics = [#tpu.dimension_semantics<parallel>], iteration_bounds = array<i64: 2>, scalar_prefetch = 0 : i64, scratch_operands = 0 : i64, tpu.core_type = #tpu.core_type<tc>, window_params = [{transform_indices = @transform_0, window_bounds = array<i64: 64, 576>}, {pipeline_mode = #tpu.pipeline_mode<synchronous>, transform_indices = @transform_1, window_bounds = array<i64: 576, 64>}, {pipeline_mode = #tpu.pipeline_mode<synchronous>, transform_indices = @transform_2, window_bounds = array<i64: 1, 64>}, {pipeline_mode = #tpu.pipeline_mode<synchronous>, transform_indices = @transform_3, window_bounds = array<i64: 1, 64>}, {transform_indices = @transform_4, window_bounds = array<i64: 64, 64>}]} {
    %c0 = arith.constant 0 : index
    %c0_0 = arith.constant 0 : index
    %0 = vector.load %arg1[%c0, %c0_0] : memref<64x576xbf16, #tpu.memory_space<vmem>>, vector<64x576xbf16>
    %c0_1 = arith.constant 0 : index
    %c0_2 = arith.constant 0 : index
    %1 = vector.load %arg2[%c0_1, %c0_2] : memref<576x64xbf16, #tpu.memory_space<vmem>>, vector<576x64xbf16>
    %cst = arith.constant dense<0.000000e+00> : vector<64x64xf32>
    %2 = tpu.matmul %0, %1, %cst {dimension_numbers = #tpu.dot_dimension_numbers<[1], [0], [0], [1], [0, 0, 1, 1], [], []>} : vector<64x576xbf16>, vector<576x64xbf16>, vector<64x64xf32> -> vector<64x64xf32>
    %c0_3 = arith.constant 0 : index
    %c0_4 = arith.constant 0 : index
    %3 = vector.load %arg3[%c0_3, %c0_4] : memref<1x64xf32, #tpu.memory_space<vmem>>, vector<1x64xf32>
    %4 = vector.broadcast %3 : vector<1x64xf32> to vector<64x64xf32>
    %5 = arith.mulf %2, %4 : vector<64x64xf32>
    %c0_5 = arith.constant 0 : index
    %c0_6 = arith.constant 0 : index
    %6 = vector.load %arg4[%c0_5, %c0_6] : memref<1x64xf32, #tpu.memory_space<vmem>>, vector<1x64xf32>
    %7 = vector.broadcast %6 : vector<1x64xf32> to vector<64x64xf32>
    %8 = arith.addf %5, %7 : vector<64x64xf32>
    %9 = arith.truncf %8 : vector<64x64xf32> to vector<64x64xbf16>
    %c0_7 = arith.constant 0 : index
    %c0_8 = arith.constant 0 : index
    %10 = vector.load %arg5[%c0_7, %c0_8] : memref<64x64xbf16, #tpu.memory_space<vmem>>, vector<64x64xbf16>
    tpu.vector_store %arg5[%c0_7, %c0_8], %9 {strides = array<i32>} : memref<64x64xbf16, #tpu.memory_space<vmem>>, vector<64x64xbf16>,
    return
  }
  func.func @transform_0(%arg0: i32) -> (i32, i32) {
    %c0_i32 = arith.constant 0 : i32
    %c0_i32_0 = arith.constant 0 : i32
    return %arg0, %c0_i32 : i32, i32
  }
  func.func @transform_1(%arg0: i32) -> (i32, i32) {
    %c0_i32 = arith.constant 0 : i32
    %c0_i32_0 = arith.constant 0 : i32
    %c0_i32_1 = arith.constant 0 : i32
    return %c0_i32, %c0_i32_0 : i32, i32
  }
  func.func @transform_2(%arg0: i32) -> (i32, i32) {
    %c0_i32 = arith.constant 0 : i32
    %c0_i32_0 = arith.constant 0 : i32
    %c0_i32_1 = arith.constant 0 : i32
    return %c0_i32, %c0_i32_0 : i32, i32
  }
  func.func @transform_3(%arg0: i32) -> (i32, i32) {
    %c0_i32 = arith.constant 0 : i32
    %c0_i32_0 = arith.constant 0 : i32
    %c0_i32_1 = arith.constant 0 : i32
    return %c0_i32, %c0_i32_0 : i32, i32
  }
  func.func @transform_4(%arg0: i32) -> (i32, i32) {
    %c0_i32 = arith.constant 0 : i32
    %c0_i32_0 = arith.constant 0 : i32
    return %arg0, %c0_i32 : i32, i32
  }
}

module attributes {stable_mosaic.version = 11 : i64} {
  func.func @_se_scale_residual_kernel(%arg0: i32, %arg1: i32, %arg2: memref<1x64x64xbf16, #tpu.memory_space<vmem>>, %arg3: memref<1x1x64xf32, #tpu.memory_space<vmem>>, %arg4: memref<1x64x64xf32, #tpu.memory_space<vmem>>, %arg5: memref<1x64x64xf32, #tpu.memory_space<vmem>>) attributes {dimension_semantics = [#tpu.dimension_semantics<parallel>, #tpu.dimension_semantics<parallel>], iteration_bounds = array<i64: 2, 1>, scalar_prefetch = 0 : i64, scratch_operands = 0 : i64, tpu.core_type = #tpu.core_type<tc>, window_params = [{transform_indices = @transform_0, window_bounds = array<i64: 1, 64, 64>}, {transform_indices = @transform_1, window_bounds = array<i64: 1, 1, 64>}, {transform_indices = @transform_2, window_bounds = array<i64: 1, 64, 64>}, {transform_indices = @transform_3, window_bounds = array<i64: 1, 64, 64>}]} {
    %c0 = arith.constant 0 : index
    %c0_0 = arith.constant 0 : index
    %c0_1 = arith.constant 0 : index
    %0 = vector.load %arg2[%c0, %c0_0, %c0_1] : memref<1x64x64xbf16, #tpu.memory_space<vmem>>, vector<1x64x64xbf16>
    %1 = arith.extf %0 : vector<1x64x64xbf16> to vector<1x64x64xf32>
    %c0_2 = arith.constant 0 : index
    %c0_3 = arith.constant 0 : index
    %c0_4 = arith.constant 0 : index
    %2 = vector.load %arg3[%c0_2, %c0_3, %c0_4] : memref<1x1x64xf32, #tpu.memory_space<vmem>>, vector<1x1x64xf32>
    %3 = vector.broadcast %2 : vector<1x1x64xf32> to vector<1x64x64xf32>
    %4 = arith.mulf %1, %3 : vector<1x64x64xf32>
    %c0_5 = arith.constant 0 : index
    %c0_6 = arith.constant 0 : index
    %c0_7 = arith.constant 0 : index
    %5 = vector.load %arg4[%c0_5, %c0_6, %c0_7] : memref<1x64x64xf32, #tpu.memory_space<vmem>>, vector<1x64x64xf32>
    %6 = arith.addf %4, %5 : vector<1x64x64xf32>
    %c0_8 = arith.constant 0 : index
    %c0_9 = arith.constant 0 : index
    %c0_10 = arith.constant 0 : index
    %7 = vector.load %arg5[%c0_8, %c0_9, %c0_10] : memref<1x64x64xf32, #tpu.memory_space<vmem>>, vector<1x64x64xf32>
    tpu.vector_store %arg5[%c0_8, %c0_9, %c0_10], %6 {strides = array<i32>} : memref<1x64x64xf32, #tpu.memory_space<vmem>>, vector<1x64x64xf32>,
    return
  }
  func.func @transform_0(%arg0: i32, %arg1: i32) -> (i32, i32, i32) {
    %c0_i32 = arith.constant 0 : i32
    %c0_i32_0 = arith.constant 0 : i32
    return %arg0, %arg1, %c0_i32 : i32, i32, i32
  }
  func.func @transform_1(%arg0: i32, %arg1: i32) -> (i32, i32, i32) {
    %c0_i32 = arith.constant 0 : i32
    %c0_i32_0 = arith.constant 0 : i32
    %c0_i32_1 = arith.constant 0 : i32
    return %arg0, %c0_i32, %c0_i32_0 : i32, i32, i32
  }
  func.func @transform_2(%arg0: i32, %arg1: i32) -> (i32, i32, i32) {
    %c0_i32 = arith.constant 0 : i32
    %c0_i32_0 = arith.constant 0 : i32
    return %arg0, %arg1, %c0_i32 : i32, i32, i32
  }
  func.func @transform_3(%arg0: i32, %arg1: i32) -> (i32, i32, i32) {
    %c0_i32 = arith.constant 0 : i32
    %c0_i32_0 = arith.constant 0 : i32
    return %arg0, %arg1, %c0_i32 : i32, i32, i32
  }
}

</mosaic_0001>

<bundles_post_ra>
// kernel: _bottleneck_forward.6
= control target key start
LH: loop header
LB: loop body
LE: loop exit
PB: predicated region body
PF: predicated region fallthrough
CT: control target
= control target key end

     0   :  { %s619_s12 = smov 0   ;;  %s621_s13 = smov 0   ;;  %s695_s0 = inlined_call_operand.vmem [shape: bf16[2,64,64], index: 0, kind: input, shape index: {}]   ;;  %s696_s1 = inlined_call_operand.vmem [shape: f32[64,4], index: 1, kind: input, shape index: {}]   ;;  %s697_s2 = inlined_call_operand.vmem [shape: f32[4,64], index: 2, kind: input, shape index: {}]   ;;  %s698_s3 = inlined_call_operand.vmem [shape: f32[2,1,64], index: 3, kind: output, shape index: {}]  }
   0x1   :  { %s623_s14 = smov 0  }
   0x2 LB: > { %s25_s15 = sadd.s32 1, %s591_s13  ;;  %p480_p0 = scmp.ge.s32.totalorder %s595_s14, 1  ;;  %s595_s14 = sphi %s623_s14, %s13_s14   ;;  %s591_s13 = sphi %s621_s13, %s700_s13   ;;  %s587_s12 = sphi %s619_s12, %s699_s12  }
   0x3   : > { %p27_p1 = scmp.ge.s32.totalorder %s25_s15, 2  ;;  %p156_p2 = scmp.lt.s32.totalorder %s595_s14, 3 }
   0x5   : > { %s702_s15 = smov (%p27_p1, %s25_s15), 0  ;;  %p157_p3 = pnand %p480_p0, %p156_p2 }
   0x6   : > { %p183_p4 = scmp.lt.s32.totalorder (!%p157_p3), %s587_s12, 1 }
   0x7   : > { %160 = sbr.rel (%p157_p3) target bundleno = 480 (0x1e0), region = 32 }
   0xc   : > { %v255_v0 = vld [vmem:[%s696_s1 + $0x38] sm:$0xff]  ;;  %v597_v1 = vmov 0.0   ;;  %v254_v2 = vld [vmem:[%s696_s1 + $0x30] sm:$0xff]  ;;  %vm598_vm0 = vmmov 0   ;;  %vm199_vm1 = vcmask 516096   ;;  %s704_s12 = smov (!%p183_p4, %s587_s12), 1 }
   0xd   : > { %519 = vmatprep.subr.mxu0 %v597_v1  ;;  %535 = vmatprep.mubr.msk.f32.mxu0 %vm598_vm0, %v597_v1  ;;  %200 = vst.msk [vmem:[#allocation2] sm:$0x1] %vm199_vm1, %v597_v1  ;;  %v253_v3 = vld [vmem:[%s696_s1 + $0x28] sm:$0xff]  ;;  %s488_s22 = sshll.u32 %s704_s12, 5  ;;  %v252_v4 = vld [vmem:[%s696_s1 + $0x20] sm:$0xff]  ;;  %vm218_vm2 = vcmask 523264   ;;  %s194_s17 = scalar_lea.vmem %s698_s3, %s704_s12 }
   0xe   : > { %520 = vmatpush3.msra.mxu0 %v255_v0  ;;  %538 = vmatprep.subr.mxu1 %v597_v1  ;;  %s190_s27 = scalar_lea.vmem %s695_s0, %s488_s22  ;;  %v251_v8 = vld [vmem:[%s696_s1 + $0x18] sm:$0xff]  ;;  %v250_v13 = vld [vmem:[%s696_s1 + $0x10] sm:$0xff]  ;;  %v249_v20 = vld [vmem:[%s696_s1 + $0x8] sm:$0xff]  ;;  %vm335_vm3 = vcmask 1043456   ;;  %vm331_vm4 = vcmask 31744  }
   0xf   : > { %521 = vmatprep.subr.mxu0 %v597_v1  ;;  %540 = vmatprep.mubr.msk.f32.mxu1 %vm598_vm0, %v597_v1  ;;  %v490_v5 = vld [vmem:[%s190_s27] sm:$0xff]   ;;  %v505_v6 = vld [vmem:[%s190_s27 + $0x8] sm:$0xff]   ;;  %v506_v7 = vld [vmem:[%s190_s27 + $0x10] sm:$0xff]  }
  0x10   : > { %522 = vmatpush3.msra.mxu0 %v254_v2  ;;  %v491_v9 = vunpack.c.l.bf16 %v490_v5  ;;  %v492_v10 = vunpack.c.h.bf16 %v490_v5  ;;  %v495_v11 = vunpack.c.l.bf16 %v505_v6  ;;  %v496_v12 = vunpack.c.h.bf16 %v505_v6  ;;  %v507_v18 = vld [vmem:[%s190_s27 + $0x18] sm:$0xff]   ;;  %v248_v24 = vld [vmem:[%s696_s1] sm:$0xff] }
  0x11   : > { %523 = vmatprep.subr.mxu0 %v597_v1  ;;  %v499_v14 = vunpack.c.l.bf16 %v506_v7  ;;  %v500_v21 = vunpack.c.h.bf16 %v506_v7  ;;  %v503_v25 = vunpack.c.l.bf16 %v507_v18  ;;  %v504_v28 = vunpack.c.h.bf16 %v507_v18  ;;  %v330_v46 = vld [vmem:[%s697_s2] sm:$0xf] }
  0x12   : > { %524 = vmatpush3.msra.mxu0 %v253_v3  ;;  %v219_v15 = vsel %vm218_vm2, %v491_v9, 0.0  ;;  %v220_v16 = vsel %vm218_vm2, %v492_v10, 0.0  ;;  %v222_v17 = vsel %vm218_vm2, %v495_v11, 0.0  ;;  %v224_v22 = vsel %vm218_vm2, %v496_v12, 0.0  ;;  %539 = vmatpush3.msk.msra.mxu1 %vm335_vm3, %v330_v46 }
  0x13   : > { %525 = vmatprep.subr.mxu0 %v597_v1  ;;  %v221_v19 = vadd.f32 %v220_v16, %v219_v15  ;;  %v226_v26 = vsel %vm218_vm2, %v499_v14, 0.0  ;;  %v228_v29 = vsel %vm218_vm2, %v500_v21, 0.0  ;;  %v230_v31 = vsel %vm218_vm2, %v503_v25, 0.0 }
  0x14   : > { %526 = vmatpush3.msra.mxu0 %v252_v4  ;;  %v232_v33 = vsel %vm218_vm2, %v504_v28, 0.0  ;;  %v201_v41 = vld [vmem:[#allocation2] sm:$0x1] }
  0x15   : > { %527 = vmatprep.subr.mxu0 %v597_v1  ;;  %v223_v23 = vadd.f32 %v222_v17, %v221_v19 }
  0x16   : > { %528 = vmatpush3.msra.mxu0 %v251_v8 }
  0x17   : > { %529 = vmatprep.subr.mxu0 %v597_v1  ;;  %v225_v27 = vadd.f32 %v224_v22, %v223_v23 }
  0x18   : > { %530 = vmatpush3.msra.mxu0 %v250_v13 }
  0x19   : > { %531 = vmatprep.subr.mxu0 %v597_v1  ;;  %v227_v30 = vadd.f32 %v226_v26, %v225_v27 }
  0x1a   : > { %532 = vmatpush3.msra.mxu0 %v249_v20 }
  0x1b   : > { %533 = vmatprep.subr.mxu0 %v597_v1  ;;  %v229_v32 = vadd.f32 %v228_v29, %v227_v30 }
  0x1c   : > { %534 = vmatpush3.msra.mxu0 %v248_v24 }
  0x1d   : > { %v231_v34 = vadd.f32 %v230_v31, %v229_v32 }
  0x1f   : > { %v233_v35 = vadd.f32 %v232_v33, %v231_v34 }
  0x21   : > { %v234_v36 = vrot.slane %v233_v35, 4 }
  0x23   : > { %v235_v37 = vadd.f32 %v234_v36, %v233_v35 }
  0x25   : > { %v236_v38 = vrot.slane %v235_v37, 2 }
  0x27   : > { %v237_v39 = vadd.f32 %v236_v38, %v235_v37 }
  0x29   : > { %v238_v40 = vrot.slane %v237_v39, 1 }
  0x2b   : > { %v239_v42 = vadd.f32 %v238_v40, %v237_v39 }
  0x2d   : > { %v240_v43 = vadd.f32 %v239_v42, %v201_v41 }
  0x2f   : > { %242 = vst.msk [vmem:[#allocation2] sm:$0x1] %vm199_vm1, %v240_v43 }
  0x36   : > { %v246_v44 = vld [vmem:[#allocation2] sm:$0x1] }
  0x37   : > { %v247_v45 = vmul.f32 0.015625, %v246_v44 }
  0x39   : > { %536 = vmatmul.mubr.msk.f32.vlgmr.msra.gmra.mxu0 %vm218_vm2, %v247_v45 }
  0xf9   : > { %v325_v47 = vpop.f32.mrf.mxu0 }
  0xfa   : > { %v329_v48 = vmax.f32 %v325_v47, 0.0 }
  0xfb   : > { %v537_v49 = vpop.f32.mrf.mxu0 }
  0xfc   : > { %541 = vmatmul.mubr.msk.f32.vlgmr.msra.gmra.mxu1 %vm331_vm4, %v329_v48 }
 0x1bc   : > { %v405_v50 = vpop.f32.mrf.mxu1 }
 0x1bd   : > { %v409_v51 = vsub.f32 0.0, %v405_v50 }
 0x1be   : > { %v542_v52 = vpop.f32.mrf.mxu1 }
 0x1bf   : > { %v410_v53 = vmul.f32 1.442695, %v409_v51 }
 0x1c1   : > { %569 = vpow2.f32 %v410_v53 }
 0x1ce   : > { %v570_v54 = vpop.eup %569 }
 0x1cf   : > { %v412_v55 = vadd.f32 1.0, %v570_v54 }
 0x1d1   : > { %571 = vrcp.f32 %v412_v55 }
 0x1de   : > { %v572_v56 = vpop.eup %571 }
 0x1df   : > { %414 = vst.msk [vmem:[%s194_s17] sm:$0x1] %vm199_vm1, %v572_v56 }
 0x1e0 PF: > { %s13_s14 = sadd.s32 1, %s595_s14   ;;  %s699_s12 = smov %s591_s13 }
 0x1e1   : > { %p10_p5 = scmp.ge.s32.totalorder %s13_s14, 4   ;;  %s700_s13 = smov %s702_s15 }
 0x1e3   :  { %12 = sbr.rel (!%p10_p5) target bundleno = 2 (0x2), region = 70 }

// kernel: _bottleneck_forward.7
= control target key start
LH: loop header
LB: loop body
LE: loop exit
PB: predicated region body
PF: predicated region fallthrough
CT: control target
= control target key end

     0   :  { %8 = vsyncpa [#allocation3], 0  ;;  %s766_s0 = inlined_call_operand.vmem [shape: bf16[2,64,64], index: 0, kind: input, shape index: {}]   ;;  %s767_s1 = inlined_call_operand.vmem [shape: f32[2,1,64], index: 1, kind: input, shape index: {}]   ;;  %s768_s2 = inlined_call_operand.vmem [shape: f32[2,64,64], index: 2, kind: input, shape index: {}]   ;;  %s769_s3 = inlined_call_operand.hbm [shape: f32[2,64,64], index: 3, kind: output, shape index: {}]  }
   0x1   :  { %10 = vsyncpa [#allocation3 + $0x1], 0  ;;  %s624_s12 = smov 0   ;;  %s626_s13 = smov 0  }
   0x2   :  { %s628_s14 = smov 0   ;;  %s630_s15 = smov 0  }
   0x3   :  { %s632_s16 = smov 0   ;;  %s634_s17 = smov 0  }
   0x4 LB: > { %s428_s18 = sadd.s32 4294967295, %s599_s17   ;;  %s429_s19 = sadd.s32 4294967294, %s599_s17   ;;  %s599_s17 = sphi %s634_s17, %s16_s17   ;;  %s595_s16 = sphi %s632_s16, %s776_s16   ;;  %s591_s15 = sphi %s630_s15, %s775_s15   ;;  %s587_s14 = sphi %s628_s14, %s774_s14   ;;  %s583_s13 = sphi %s626_s13, %s773_s13   ;;  %s579_s12 = sphi %s624_s12, %s772_s12  }
   0x5   : > { %s28_s20 = sadd.s32 1, %s595_s16  ;;  %s119_s21 = sadd.s32 1, %s587_s14 }
   0x6   : > { %p30_p0 = scmp.ge.s32.totalorder %s28_s20, 2  ;;  %p129_p1 = scmp.ne.s32.totalorder %s587_s14, %s583_s13 }
   0x7   : > { %p130_p2 = scmp.eq.s32.totalorder %s428_s18, 1  ;;  %p135_p3 = scmp.ne.s32.totalorder %s583_s13, %s579_s12 }
   0x8   : > { %s778_s20 = smov (%p30_p0, %s28_s20), 0  ;;  %p136_p5 = scmp.eq.s32.totalorder %s429_s19, 1 }
   0x9   : > { %p664_p4 = por %p130_p2, %p129_p1  ;;  %s114_s23 = ssub.s32 %s595_s16, %s778_s20 }
   0xa   : > { %p432_p6 = scmp.ge.s32.totalorder %s599_s17, 1  ;;  %p117_p7 = scmp.eq.s32.totalorder %s114_s23, 0 }
   0xb   : > { %p671_p8 = por %p136_p5, %p135_p3  ;;  %p186_p9 = scmp.lt.s32.totalorder %s599_s17, 3 }
   0xc   : > { %s677_s25 = scalar_select %p117_p7, %s587_s14, %s119_s21  }
   0xd   : > { %p187_p10 = pnand %p432_p6, %p186_p9 }
   0xe   : > { %p227_p11 = scmp.lt.s32.totalorder (!%p187_p10), %s591_s15, 1  ;;  %s223_s26 = sand.u32 (!%p187_p10), 1, %s583_s13  }
   0xf   : > { %190 = sbr.rel (%p187_p10) target bundleno = 48 (0x30), region = 32  ;;  %s433_s28 = sshll.u32 (!%p187_p10), %s223_s26, 6 }
  0x10   : > { %s225_s19 = scalar_lea.vmem (!%p187_p10), [#allocation2], %s433_s28  ;;  %s446_s23 = sshll.u32 (!%p187_p10), %s591_s15, 10 }
  0x11   : > { %s322_s21 = sshll.u32 (!%p187_p10), %s225_s19, 4  ;;  %s713_s28 = scalar_lea.hbm (!%p187_p10), %s769_s3, %s446_s23  ;;  %s705_s21 = int_to_ptr.vmem [resolvable:$true] %s322_s21 }
  0x12   : > { %s523_s30 = scalar_lea.vmem (!%p187_p10), %s705_s21, 1024  ;;  %s601_s4 = smov (!%p187_p10), [#allocation2]  }
  0x13   : > { %p524_p12 = scmp.ne.s32.totalorder (!%p187_p10), %s705_s21, %s523_s30 }
  0x14   : > { %s228_s27 = scalar_select %p227_p11, %s591_s15, 1  ;;  %vm297_vm0 = vcmask 523264  }
  0x15   : > { %p525_p13 = pnand %p524_p12, %p664_p4 }
  0x16   : > { %s444_s29 = sshll.u32 %s228_s27, 5  ;;  %s238_s5 = scalar_lea.vmem %s767_s1, %s228_s27 }
  0x17   : > { %s234_s8 = scalar_lea.vmem %s766_s0, %s444_s29  ;;  %s445_s9 = sshll.u32 %s228_s27, 6  ;;  %v438_v0 = vld [vmem:[%s238_s5] ss:$0 sm:$0xff] }
  0x18   : > { %s693_s18 = scalar_lea.vmem %s768_s2, %s445_s9  ;;  %v448_v1 = vld [vmem:[%s234_s8] sm:$0xff]   ;;  %v463_v2 = vld [vmem:[%s234_s8 + $0x8] sm:$0xff]   ;;  %v464_v3 = vld [vmem:[%s234_s8 + $0x10] sm:$0xff]   ;;  %s721_s29 = scalar_lea.sflag [#allocation3], %s223_s26 }
  0x19   : > { %v449_v4 = vunpack.c.l.bf16 %v448_v1  ;;  %v281_v5 = vld [vmem:[%s693_s18] sm:$0xff]  ;;  %v450_v6 = vunpack.c.h.bf16 %v448_v1  ;;  %v453_v7 = vunpack.c.l.bf16 %v463_v2  ;;  %v454_v8 = vunpack.c.h.bf16 %v463_v2  ;;  %v282_v9 = vld [vmem:[%s693_s18 + $0x8] sm:$0xff]  ;;  %v283_v10 = vld [vmem:[%s693_s18 + $0x10] sm:$0xff]  ;;  %p526_p0 = pneg %p525_p13  ;;  %s527_s5 = sshll.u32 %s601_s4, 4  ;;  %s528_s5 = int_to_ptr.vmem [resolvable:$false] %s527_s5 }
  0x1a   : > { %v284_v11 = vld [vmem:[%s693_s18 + $0x18] sm:$0xff]  ;;  %v457_v12 = vunpack.c.l.bf16 %v464_v3  ;;  %v458_v13 = vunpack.c.h.bf16 %v464_v3  ;;  %v285_v18 = vld [vmem:[%s693_s18 + $0x20] sm:$0xff]  ;;  %v286_v19 = vld [vmem:[%s693_s18 + $0x28] sm:$0xff]  ;;  %s529_s6 = scalar_lea.vmem %s528_s5, 2048  ;;  %p530_p1 = scmp.lt.s32.totalorder %s705_s21, %s528_s5 }
  0x1b   : > { %v273_v14 = vmul.f32 %v449_v4, %v438_v0  ;;  %v274_v15 = vmul.f32 %v450_v6, %v438_v0  ;;  %v275_v16 = vmul.f32 %v453_v7, %v438_v0  ;;  %v276_v17 = vmul.f32 %v454_v8, %v438_v0  ;;  %v465_v20 = vld [vmem:[%s234_s8 + $0x18] sm:$0xff]   ;;  %v287_v29 = vld [vmem:[%s693_s18 + $0x30] sm:$0xff]  ;;  %p531_p2 = scmp.lt.s32.totalorder %s529_s6, %s523_s30 }
  0x1c   : > { %v277_v21 = vmul.f32 %v457_v12, %v438_v0  ;;  %v278_v22 = vmul.f32 %v458_v13, %v438_v0  ;;  %v461_v23 = vunpack.c.l.bf16 %v465_v20  ;;  %v462_v24 = vunpack.c.h.bf16 %v465_v20  ;;  %v288_v30 = vld [vmem:[%s693_s18 + $0x38] sm:$0xff] }
  0x1d   : > { %v289_v25 = vadd.f32 %v281_v5, %v273_v14  ;;  %v290_v26 = vadd.f32 %v282_v9, %v274_v15  ;;  %v291_v27 = vadd.f32 %v283_v10, %v275_v16  ;;  %v292_v28 = vadd.f32 %v284_v11, %v276_v17  ;;  %p532_p3 = por %p531_p2, %p530_p1 }
  0x1e   : > { %v293_v31 = vadd.f32 %v285_v18, %v277_v21  ;;  %v294_v32 = vadd.f32 %v286_v19, %v278_v22  ;;  %v279_v33 = vmul.f32 %v461_v23, %v438_v0  ;;  %v280_v34 = vmul.f32 %v462_v24, %v438_v0 }
  0x1f   : > { %298 = vst.msk [vmem:[%s225_s19] sm:$0xff] %vm297_vm0, %v289_v25  ;;  %299 = vst.msk [vmem:[%s225_s19 + $0x8] sm:$0xff] %vm297_vm0, %v290_v26  ;;  %p533_p5 = pnand %p532_p3, %p526_p0 }
  0x20   : > { %300 = vst.msk [vmem:[%s225_s19 + $0x10] sm:$0xff] %vm297_vm0, %v291_v27  ;;  %301 = vst.msk [vmem:[%s225_s19 + $0x18] sm:$0xff] %vm297_vm0, %v292_v28  ;;  %v295_v35 = vadd.f32 %v287_v29, %v279_v33  ;;  %v296_v36 = vadd.f32 %v288_v30, %v280_v34 }
  0x21   : > { %302 = vst.msk [vmem:[%s225_s19 + $0x20] sm:$0xff] %vm297_vm0, %v293_v31  ;;  %303 = vst.msk [vmem:[%s225_s19 + $0x28] sm:$0xff] %vm297_vm0, %v294_v32 }
  0x22   : > { %304 = vst.msk [vmem:[%s225_s19 + $0x30] sm:$0xff] %vm297_vm0, %v295_v35  ;;  %305 = vst.msk [vmem:[%s225_s19 + $0x38] sm:$0xff] %vm297_vm0, %v296_v36 }
  0x23   : > { %536 = shalt.err (!%p533_p5)
}
  0x24   : > { %s537_s26 = scalar_lea.hbm %s713_s28, 1024  ;;  %s541_s9 = scalar_lea.hbm %s769_s3, 2048 }
  0x25   : > { %p538_p6 = scmp.ne.s32.totalorder %s713_s28, %s537_s26  ;;  %p542_p10 = scmp.lt.s32.totalorder %s713_s28, %s769_s3 }
  0x26   : > { %p543_p11 = scmp.lt.s32.totalorder %s541_s9, %s537_s26 }
  0x27   : > { %p539_p7 = pnand %p538_p6, %p664_p4 }
  0x28   : > { %p544_p12 = por %p543_p11, %p542_p10 }
  0x29   : > { %p540_p9 = pneg %p539_p7 }
  0x2b   : > { %p545_p13 = pnand %p544_p12, %p540_p9 }
  0x2d   : > { %548 = shalt.err (!%p545_p13)
}
  0x2e   : > { %s602_s18 = smov 128   ;;  %s603_s19 = smov 8  }
  0x2f   : > { %466 = dma.vmem_to_hbm [thread:$0]  (%p664_p4), %s705_s21, 1024, %s713_s28, %s721_s29, %s602_s18, %s602_s18, %s603_s19  }
  0x30 PF: > { %p472_p0 = scmp.ge.s32.totalorder %s599_s17, 2  ;;  %s337_s23 = sand.u32 1, %s579_s12  }
  0x31   : > { %s338_s15 = scalar_lea.sflag [#allocation3], %s337_s23 }
  0x32   : > { %p469_p1 = pnand %p472_p0, %p671_p8 }
  0x34   : > { %p470_p2 = pneg %p469_p1 }
  0x36   : > { %574 = dma.done.wait (%p470_p2), %s338_s15, 1024  }
  0x37   : > { %576 = vsyncadd (%p470_p2), %s338_s15, 4294966272  ;;  %s16_s17 = sadd.s32 1, %s599_s17   ;;  %s772_s12 = smov %s583_s13 }
  0x38   : > { %p13_p3 = scmp.ge.s32.totalorder %s16_s17, 4   ;;  %s773_s13 = smov %s587_s14 }
  0x39   : > { %s774_s14 = smov %s677_s25  ;;  %s775_s15 = smov %s595_s16 }
  0x3a   : > { %s776_s16 = smov %s778_s20  ;;  %15 = sbr.rel (!%p13_p3) target bundleno = 4 (0x4), region = 73 }
  0x3f   :  { %343 = vsyncpa [#allocation3], 1 }
  0x40   :  { %345 = vsyncpa [#allocation3 + $0x1], 1 }

// kernel: _bottleneck_forward.4
= control target key start
LH: loop header
LB: loop body
LE: loop exit
PB: predicated region body
PF: predicated region fallthrough
CT: control target
= control target key end

     0   :  { %s1227_s12 = smov 0   ;;  %s1401_s0 = inlined_call_operand.vmem [shape: bf16[128,576], index: 0, kind: input, shape index: {}]   ;;  %s1402_s1 = inlined_call_operand.vmem [shape: bf16[576,64], index: 1, kind: input, shape index: {}]   ;;  %s1403_s2 = inlined_call_operand.vmem [shape: f32[1,64], index: 2, kind: input, shape index: {}]   ;;  %s1404_s3 = inlined_call_operand.vmem [shape: bf16[128,64], index: 3, kind: output, shape index: {}]  }
   0x1 LB: > { %s926_s13 = sadd.s32 4294967295, %s1205_s12   ;;  %p930_p0 = scmp.ge.s32.totalorder %s1205_s12, 1  ;;  %s1205_s12 = sphi %s1227_s12, %s13_s12  }
   0x2   : > { %p139_p1 = scmp.lt.s32.totalorder %s1205_s12, 3 }
   0x4   : > { %p140_p2 = pnand %p930_p0, %p139_p1 }
   0x5   : > { %s931_s19 = sshll.u32 (!%p140_p2), %s926_s13, 3 }
   0x6   : > { %143 = sbr.rel (%p140_p2) target bundleno = 286 (0x11e), region = 32  ;;  %p165_p3 = scmp.lt.s32.totalorder (!%p140_p2), %s931_s19, 15 }
   0xb   : > { %v1135_v0 = vld [vmem:[%s1402_s1 + $0x78] sm:$0xff]   ;;  %v1139_v4 = vld [vmem:[%s1402_s1 + $0x70] sm:$0xff]   ;;  %v1143_v8 = vld [vmem:[%s1402_s1 + $0x68] sm:$0xff]   ;;  %s1406_s19 = smov (!%p165_p3, %s931_s19), 15  ;;  %vm590_vm0 = vcmask 523264   ;;  %vm861_vm1 = vcmask 519168  }
   0xc   : > { %v1136_v1 = vld [vmem:[%s1402_s1 + $0xf8] sm:$0xff]   ;;  %1014 = vmatprep.subr.bf16.mxu0 %v1135_v0  ;;  %v1140_v5 = vld [vmem:[%s1402_s1 + $0xf0] sm:$0xff]   ;;  %v1144_v9 = vld [vmem:[%s1402_s1 + $0xe8] sm:$0xff]   ;;  %s1126_s16 = smul.u32 20, %s1406_s19  ;;  %s934_s17 = sshll.u32 %s1406_s19, 2 }
   0xd   : > { %v1137_v2 = vld [vmem:[%s1402_s1 + $0x38] sm:$0xff]   ;;  %1054 = vmatprep.subr.bf16.mxu1 %v1136_v1  ;;  %v1141_v6 = vld [vmem:[%s1402_s1 + $0x30] sm:$0xff]   ;;  %v1145_v10 = vld [vmem:[%s1402_s1 + $0x28] sm:$0xff]   ;;  %s1380_s21 = scalar_lea.vmem %s1404_s3, %s934_s17 }
   0xe   : > { %v1138_v3 = vld [vmem:[%s1402_s1 + $0xb8] sm:$0xff]   ;;  %1015 = vmatpush3.bf16.msra.mxu0 %v1137_v2  ;;  %v1142_v7 = vld [vmem:[%s1402_s1 + $0xb0] sm:$0xff]   ;;  %v1146_v11 = vld [vmem:[%s1402_s1 + $0xa8] sm:$0xff]   ;;  %s1333_s13 = scalar_lea.vmem %s1401_s0, %s1126_s16 }
   0xf   : > { %1055 = vmatpush3.bf16.msra.mxu1 %v1138_v3  ;;  %1016 = vmatprep.subr.bf16.mxu0 %v1139_v4  ;;  %v1147_v12 = vld [vmem:[%s1402_s1 + $0x60] sm:$0xff]   ;;  %v1151_v16 = vld [vmem:[%s1402_s1 + $0x58] sm:$0xff]   ;;  %v1155_v20 = vld [vmem:[%s1402_s1 + $0x50] sm:$0xff]  }
  0x10   : > { %1056 = vmatprep.subr.bf16.mxu1 %v1140_v5  ;;  %v1148_v13 = vld [vmem:[%s1402_s1 + $0xe0] sm:$0xff]   ;;  %v1152_v17 = vld [vmem:[%s1402_s1 + $0xd8] sm:$0xff]   ;;  %v1156_v21 = vld [vmem:[%s1402_s1 + $0xd0] sm:$0xff]  }
  0x11   : > { %v1149_v14 = vld [vmem:[%s1402_s1 + $0x20] sm:$0xff]   ;;  %v1153_v18 = vld [vmem:[%s1402_s1 + $0x18] sm:$0xff]   ;;  %v1157_v22 = vld [vmem:[%s1402_s1 + $0x10] sm:$0xff]  }
  0x12   : > { %1017 = vmatpush3.bf16.msra.mxu0 %v1141_v6  ;;  %v1150_v15 = vld [vmem:[%s1402_s1 + $0xa0] sm:$0xff]   ;;  %v1154_v19 = vld [vmem:[%s1402_s1 + $0x98] sm:$0xff]   ;;  %v1158_v23 = vld [vmem:[%s1402_s1 + $0x90] sm:$0xff]  }
  0x13   : > { %1057 = vmatpush3.bf16.msra.mxu1 %v1142_v7  ;;  %1018 = vmatprep.subr.bf16.mxu0 %v1143_v8  ;;  %v1159_v24 = vld [vmem:[%s1402_s1 + $0x48] sm:$0xff]   ;;  %v1163_v28 = vld [vmem:[%s1402_s1 + $0x40] sm:$0xff]   ;;  %v1173_v36 = vld [vmem:[%s1402_s1 + $0x118] sm:$0xff]  }
  0x14   : > { %1058 = vmatprep.subr.bf16.mxu1 %v1144_v9  ;;  %v1160_v25 = vld [vmem:[%s1402_s1 + $0xc8] sm:$0xff]   ;;  %v1164_v29 = vld [vmem:[%s1402_s1 + $0xc0] sm:$0xff]   ;;  %v1180_v39 = vld [vmem:[%s1402_s1 + $0x110] sm:$0xff]  }
  0x15   : > { %v1161_v26 = vld [vmem:[%s1402_s1 + $0x8] sm:$0xff]   ;;  %v1165_v30 = vld [vmem:[%s1402_s1] sm:$0xff]   ;;  %v1183_v43 = vld [vmem:[%s1333_s13 + $0x5c] ss:$20 sps:$4 sm:$0xff]  }
  0x16   : > { %1019 = vmatpush3.bf16.msra.mxu0 %v1145_v10  ;;  %v1162_v27 = vld [vmem:[%s1402_s1 + $0x88] sm:$0xff]   ;;  %v1166_v31 = vld [vmem:[%s1402_s1 + $0x80] sm:$0xff]   ;;  %v1188_v48 = vld [vmem:[%s1333_s13 + $0x7c] ss:$20 sps:$4 sm:$0xff]  }
  0x17   : > { %1059 = vmatpush3.bf16.msra.mxu1 %v1146_v11  ;;  %1020 = vmatprep.subr.bf16.mxu0 %v1147_v12  ;;  %v1167_v32 = vld [vmem:[%s1333_s13] ss:$20 sps:$4 sm:$0xff]   ;;  %v1169_v33 = vld [vmem:[%s1333_s13 + $0x4] ss:$20 sps:$4 sm:$0xff]   ;;  %v1170_v34 = vld [vmem:[%s1333_s13 + $0x8] ss:$20 sps:$4 sm:$0xff]  }
  0x18   : > { %1060 = vmatprep.subr.bf16.mxu1 %v1148_v13  ;;  %v1172_v35 = vld [vmem:[%s1333_s13 + $0xc] ss:$20 sps:$4 sm:$0xff]   ;;  %635 = vmatprep.mubr.bf16.mxu0 %v1169_v33  ;;  %v1176_v38 = vld [vmem:[%s1333_s13 + $0x34] ss:$20 sps:$4 sm:$0xff]   ;;  %v1179_v41 = vld [vmem:[%s1333_s13 + $0x30] ss:$20 sps:$4 sm:$0xff]  }
  0x19   : > { %700 = vmatprep.mubr.bf16.mxu1 %v1172_v35  ;;  %v1174_v37 = vld [vmem:[%s1333_s13 + $0x2c] ss:$20 sps:$4 sm:$0xff]   ;;  %v1178_v40 = vld [vmem:[%s1333_s13 + $0x28] ss:$20 sps:$4 sm:$0xff]   ;;  %v1185_v46 = vld [vmem:[%s1333_s13 + $0x50] ss:$20 sps:$4 sm:$0xff]  }
  0x1a   : > { %1021 = vmatpush3.bf16.msra.mxu0 %v1149_v14  ;;  %v1181_v42 = vld [vmem:[%s1333_s13 + $0x54] ss:$20 sps:$4 sm:$0xff]   ;;  %v1194_v45 = vld [vmem:[%s1402_s1 + $0x100] sm:$0xff]   ;;  %v1186_v47 = vld [vmem:[%s1333_s13 + $0x58] ss:$20 sps:$4 sm:$0xff]  }
  0x1b   : > { %1061 = vmatpush3.bf16.msra.mxu1 %v1150_v15  ;;  %1022 = vmatprep.subr.bf16.mxu0 %v1151_v16  ;;  %v1187_v44 = vld [vmem:[%s1402_s1 + $0x108] sm:$0xff]   ;;  %v1190_v49 = vld [vmem:[%s1333_s13 + $0x84] ss:$20 sps:$4 sm:$0xff]   ;;  %v1193_v51 = vld [vmem:[%s1333_s13 + $0x80] ss:$20 sps:$4 sm:$0xff]  }
  0x1c   : > { %1062 = vmatprep.subr.bf16.mxu1 %v1152_v17  ;;  %v1192_v50 = vld [vmem:[%s1333_s13 + $0x78] ss:$20 sps:$4 sm:$0xff]   ;;  %v1195_v52 = vld [vmem:[%s1333_s13 + $0x10] ss:$20 sps:$4 sm:$0xff]   ;;  %v1196_v53 = vld [vmem:[%s1333_s13 + $0x60] ss:$20 sps:$4 sm:$0xff]  }
  0x1d   : > { %v1197_v54 = vld [vmem:[%s1333_s13 + $0x38] ss:$20 sps:$4 sm:$0xff]   ;;  %v1198_v55 = vld [vmem:[%s1333_s13 + $0x88] ss:$20 sps:$4 sm:$0xff]  }
  0x1e   : > { %1023 = vmatpush3.bf16.msra.mxu0 %v1153_v18 }
  0x1f   : > { %1063 = vmatpush3.bf16.msra.mxu1 %v1154_v19  ;;  %1024 = vmatprep.subr.bf16.mxu0 %v1155_v20 }
  0x20   : > { %1064 = vmatprep.subr.bf16.mxu1 %v1156_v21 }
  0x22   : > { %1025 = vmatpush3.bf16.msra.mxu0 %v1157_v22 }
  0x23   : > { %1065 = vmatpush3.bf16.msra.mxu1 %v1158_v23  ;;  %1026 = vmatprep.subr.bf16.mxu0 %v1159_v24 }
  0x24   : > { %1066 = vmatprep.subr.bf16.mxu1 %v1160_v25 }
  0x26   : > { %1027 = vmatpush3.bf16.msra.mxu0 %v1161_v26 }
  0x27   : > { %1067 = vmatpush3.bf16.msra.mxu1 %v1162_v27  ;;  %1028 = vmatprep.subr.bf16.mxu0 %v1163_v28 }
  0x28   : > { %1068 = vmatprep.subr.bf16.mxu1 %v1164_v29 }
  0x2a   : > { %1029 = vmatpush3.bf16.msra.mxu0 %v1165_v30 }
  0x2b   : > { %1069 = vmatpush3.bf16.msra.mxu1 %v1166_v31  ;;  %1102 = vmatprep.subr.bf16.mxu0 %v1173_v36 }
  0x2c   : > { %1118 = vmatprep.subr.bf16.mxu1 %v1173_v36 }
  0x2d   : > { %636 = vmatmul.mubr.bf16.vlgmr.msra.gmra.mxu0 %v1167_v32 }
  0x2e   : > { %701 = vmatmul.mubr.bf16.vlgmr.msra.gmra.mxu1 %v1170_v34  ;;  %1103 = vmatpush3.bf16.msra.mxu0 %v1173_v36 }
  0x2f   : > { %1122 = vmatpush3.bf16.msra.mxu1 %v1173_v36  ;;  %643 = vmatprep.mubr.bf16.mxu0 %v1174_v37 }
  0x30   : > { %708 = vmatprep.mubr.bf16.mxu1 %v1176_v38  ;;  %1104 = vmatprep.subr.bf16.mxu0 %v1180_v39 }
  0x31   : > { %1119 = vmatprep.subr.bf16.mxu1 %v1180_v39 }
  0x32   : > { %1105 = vmatpush3.bf16.msra.mxu0 %v1180_v39 }
  0x33   : > { %1123 = vmatpush3.bf16.msra.mxu1 %v1180_v39  ;;  %1106 = vmatprep.subr.bf16.mxu0 %v1187_v44 }
  0x34   : > { %1120 = vmatprep.subr.bf16.mxu1 %v1187_v44 }
  0x35   : > { %644 = vmatmul.mubr.bf16.gmra.mxu0 %v1178_v40 }
  0x36   : > { %709 = vmatmul.mubr.bf16.gmra.mxu1 %v1179_v41  ;;  %651 = vmatprep.mubr.bf16.mxu0 %v1181_v42  ;;  %v995_v42 = vld [vmem:[%s1403_s2] ss:$0 sm:$0xff] }
  0x37   : > { %716 = vmatprep.mubr.bf16.mxu1 %v1183_v43  ;;  %1107 = vmatpush3.bf16.msra.mxu0 %v1187_v44 }
  0x38   : > { %1124 = vmatpush3.bf16.msra.mxu1 %v1187_v44  ;;  %1108 = vmatprep.subr.bf16.mxu0 %v1194_v45 }
  0x39   : > { %1121 = vmatprep.subr.bf16.mxu1 %v1194_v45 }
  0x3b   : > { %1109 = vmatpush3.bf16.msra.mxu0 %v1194_v45 }
  0x3c   : > { %1125 = vmatpush3.bf16.msra.mxu1 %v1194_v45 }
  0x3d   : > { %652 = vmatmul.mubr.bf16.gmra.mxu0 %v1185_v46 }
  0x3e   : > { %717 = vmatmul.mubr.bf16.gmra.mxu1 %v1186_v47  ;;  %659 = vmatprep.mubr.bf16.mxu0 %v1188_v48 }
  0x3f   : > { %724 = vmatprep.mubr.bf16.mxu1 %v1190_v49 }
  0x45   : > { %660 = vmatmul.mubr.bf16.gmra.mxu0 %v1192_v50 }
  0x46   : > { %725 = vmatmul.mubr.bf16.gmra.mxu1 %v1193_v51  ;;  %1110 = vmatprep.mubr.msk.bf16.mxu0 %vm590_vm0, %v1195_v52 }
  0x47   : > { %1114 = vmatprep.mubr.msk.bf16.mxu1 %vm590_vm0, %v1196_v53 }
  0x4d   : > { %1111 = vmatmul.mubr.msk.bf16.vlgmr.msra.gmra.mxu0 %vm590_vm0, %v1197_v54 }
  0x4e   : > { %1115 = vmatmul.mubr.msk.bf16.vlgmr.msra.gmra.mxu1 %vm590_vm0, %v1198_v55 }
  0xed   : > { %v1030_v56 = vpop.f32.mrf.mxu0 }
  0xee   : > { %v1070_v57 = vpop.f32.mrf.mxu1 }
  0xef   : > { %v1031_v58 = vpop.f32.mrf.mxu0 }
  0xf0   : > { %v1071_v59 = vpop.f32.mrf.mxu1  ;;  %v1032_v25 = vadd.f32 %v1031_v58, %v1030_v56 }
  0xf1   : > { %v1033_v60 = vpop.f32.mrf.mxu0  ;;  %v1072_v26 = vadd.f32 %v1071_v59, %v1070_v57 }
  0xf2   : > { %v1073_v61 = vpop.f32.mrf.mxu1 }
  0xf3   : > { %v1034_v62 = vpop.f32.mrf.mxu0  ;;  %v703_v46 = vadd.f32 %v1072_v26, %v1032_v25 }
  0xf4   : > { %v1074_v63 = vpop.f32.mrf.mxu1  ;;  %v1035_v27 = vadd.f32 %v1034_v62, %v1033_v60 }
  0xf5   : > { %v1036_v0 = vpop.f32.mrf.mxu0  ;;  %v1075_v28 = vadd.f32 %v1074_v63, %v1073_v61 }
  0xf6   : > { %v1076_v1 = vpop.f32.mrf.mxu1 }
  0xf7   : > { %v1037_v2 = vpop.f32.mrf.mxu0  ;;  %v706_v51 = vadd.f32 %v1075_v28, %v1035_v27 }
  0xf8   : > { %v1077_v3 = vpop.f32.mrf.mxu1  ;;  %v1038_v19 = vadd.f32 %v1037_v2, %v1036_v0 }
  0xf9   : > { %v1039_v4 = vpop.f32.mrf.mxu0  ;;  %v1078_v20 = vadd.f32 %v1077_v3, %v1076_v1 }
  0xfa   : > { %v1079_v5 = vpop.f32.mrf.mxu1 }
  0xfb   : > { %v1040_v6 = vpop.f32.mrf.mxu0  ;;  %v711_v38 = vadd.f32 %v1078_v20, %v1038_v19 }
  0xfc   : > { %v1080_v7 = vpop.f32.mrf.mxu1  ;;  %v1041_v30 = vadd.f32 %v1040_v6, %v1039_v4 }
  0xfd   : > { %v1042_v8 = vpop.f32.mrf.mxu0  ;;  %v1081_v31 = vadd.f32 %v1080_v7, %v1079_v5 }
  0xfe   : > { %v1082_v9 = vpop.f32.mrf.mxu1 }
  0xff   : > { %v1043_v10 = vpop.f32.mrf.mxu0  ;;  %v714_v50 = vadd.f32 %v1081_v31, %v1041_v30 }
 0x100   : > { %v1083_v11 = vpop.f32.mrf.mxu1  ;;  %v1044_v32 = vadd.f32 %v1043_v10, %v1042_v8 }
 0x101   : > { %v1045_v12 = vpop.f32.mrf.mxu0  ;;  %v1084_v33 = vadd.f32 %v1083_v11, %v1082_v9 }
 0x102   : > { %v1085_v13 = vpop.f32.mrf.mxu1 }
 0x103   : > { %v1046_v14 = vpop.f32.mrf.mxu0  ;;  %v719_v49 = vadd.f32 %v1084_v33, %v1044_v32 }
 0x104   : > { %v1086_v15 = vpop.f32.mrf.mxu1  ;;  %v1047_v35 = vadd.f32 %v1046_v14, %v1045_v12 }
 0x105   : > { %v1048_v16 = vpop.f32.mrf.mxu0  ;;  %v1087_v36 = vadd.f32 %v1086_v15, %v1085_v13 }
 0x106   : > { %v1088_v17 = vpop.f32.mrf.mxu1 }
 0x107   : > { %v1049_v18 = vpop.f32.mrf.mxu0  ;;  %v722_v55 = vadd.f32 %v1087_v36, %v1047_v35 }
 0x108   : > { %v1089_v21 = vpop.f32.mrf.mxu1  ;;  %v1050_v22 = vadd.f32 %v1049_v18, %v1048_v16 }
 0x109   : > { %v1090_v23 = vadd.f32 %v1089_v21, %v1088_v17  ;;  %v1051_v24 = vpop.f32.mrf.mxu0 }
 0x10a   : > { %v1091_v29 = vpop.f32.mrf.mxu1 }
 0x10b   : > { %v1052_v34 = vpop.f32.mrf.mxu0  ;;  %v727_v43 = vadd.f32 %v1090_v23, %v1050_v22 }
 0x10c   : > { %v1092_v37 = vpop.f32.mrf.mxu1  ;;  %v1053_v39 = vadd.f32 %v1052_v34, %v1051_v24 }
 0x10d   : > { %v1093_v40 = vadd.f32 %v1092_v37, %v1091_v29  ;;  %v1112_v41 = vpop.f32.mrf.mxu0 }
 0x10e   : > { %v776_v44 = vadd.f32 %v1112_v41, %v711_v38  ;;  %v1116_v45 = vpop.f32.mrf.mxu1 }
 0x10f   : > { %v792_v47 = vadd.f32 %v1116_v45, %v727_v43  ;;  %v767_v48 = vpop.f32.mrf.mxu0  ;;  %v730_v59 = vadd.f32 %v1093_v40, %v1053_v39 }
 0x110   : > { %vm800_vm2 = vcmp.gt.f32.partialorder %v776_v44, 0.0  ;;  %v815_v52 = vmul.f32 %v995_v42, %v776_v44  ;;  %v768_v53 = vadd.f32 %v767_v48, %v703_v46  ;;  %v783_v54 = vpop.f32.mrf.mxu1 }
 0x111   : > { %vm804_vm3 = vcmp.gt.f32.partialorder %v792_v47, 0.0  ;;  %v819_v56 = vmul.f32 %v995_v42, %v792_v47  ;;  %v784_v57 = vadd.f32 %v783_v54, %v719_v49  ;;  %v1113_v58 = vpop.f32.mrf.mxu0 }
 0x112   : > { %v823_v60 = vsel %vm800_vm2, %v776_v44, %v815_v52  ;;  %vm798_vm4 = vcmp.gt.f32.partialorder %v768_v53, 0.0  ;;  %v813_v61 = vmul.f32 %v995_v42, %v768_v53  ;;  %v779_v62 = vadd.f32 %v1113_v58, %v714_v50  ;;  %v1117_v63 = vpop.f32.mrf.mxu1 }
 0x113   : > { %v1008_v0 = vpack.c.bf16 %v823_v60, %v823_v60  ;;  %v827_v1 = vsel %vm804_vm3, %v792_v47, %v819_v56  ;;  %vm802_vm5 = vcmp.gt.f32.partialorder %v784_v57, 0.0  ;;  %v817_v2 = vmul.f32 %v995_v42, %v784_v57  ;;  %v770_v3 = vpop.f32.mrf.mxu0 }
 0x114   : > { %v1012_v4 = vpack.c.bf16 %v827_v1, %v827_v1  ;;  %v821_v5 = vsel %vm798_vm4, %v768_v53, %v813_v61  ;;  %vm801_vm6 = vcmp.gt.f32.partialorder %v779_v62, 0.0  ;;  %v816_v6 = vmul.f32 %v995_v42, %v779_v62  ;;  %v786_v7 = vpop.f32.mrf.mxu1 }
 0x115   : > { %864 = vst.msk [vmem:[%s1380_s21 + $0x8] sm:$0xf] %vm861_vm1, %v1008_v0  ;;  %v1006_v8 = vpack.c.bf16 %v821_v5, %v821_v5  ;;  %v825_v9 = vsel %vm802_vm5, %v784_v57, %v817_v2  ;;  %v795_v10 = vadd.f32 %v1117_v63, %v730_v59  ;;  %v771_v11 = vadd.f32 %v770_v3, %v706_v51 }
 0x116   : > { %868 = vst.msk [vmem:[%s1380_s21 + $0x18] sm:$0xf] %vm861_vm1, %v1012_v4  ;;  %v1010_v12 = vpack.c.bf16 %v825_v9, %v825_v9  ;;  %v824_v13 = vsel %vm801_vm6, %v779_v62, %v816_v6  ;;  %v787_v14 = vadd.f32 %v786_v7, %v722_v55 }
 0x117   : > { %862 = vst.msk [vmem:[%s1380_s21] sm:$0xf] %vm861_vm1, %v1006_v8  ;;  %v1009_v15 = vpack.c.bf16 %v824_v13, %v824_v13  ;;  %vm805_vm7 = vcmp.gt.f32.partialorder %v795_v10, 0.0  ;;  %v820_v16 = vmul.f32 %v995_v42, %v795_v10  ;;  %vm799_vm8 = vcmp.gt.f32.partialorder %v771_v11, 0.0 }
 0x118   : > { %866 = vst.msk [vmem:[%s1380_s21 + $0x10] sm:$0xf] %vm861_vm1, %v1010_v12  ;;  %v814_v17 = vmul.f32 %v995_v42, %v771_v11  ;;  %vm803_vm9 = vcmp.gt.f32.partialorder %v787_v14, 0.0  ;;  %v818_v18 = vmul.f32 %v995_v42, %v787_v14 }
 0x119   : > { %865 = vst.msk [vmem:[%s1380_s21 + $0xc] sm:$0xf] %vm861_vm1, %v1009_v15  ;;  %v828_v19 = vsel %vm805_vm7, %v795_v10, %v820_v16 }
 0x11a   : > { %v1013_v20 = vpack.c.bf16 %v828_v19, %v828_v19  ;;  %v822_v21 = vsel %vm799_vm8, %v771_v11, %v814_v17  ;;  %v826_v22 = vsel %vm803_vm9, %v787_v14, %v818_v18 }
 0x11b   : > { %v1007_v23 = vpack.c.bf16 %v822_v21, %v822_v21  ;;  %v1011_v24 = vpack.c.bf16 %v826_v22, %v826_v22 }
 0x11c   : > { %869 = vst.msk [vmem:[%s1380_s21 + $0x1c] sm:$0xf] %vm861_vm1, %v1013_v20 }
 0x11d   : > { %863 = vst.msk [vmem:[%s1380_s21 + $0x4] sm:$0xf] %vm861_vm1, %v1007_v23  ;;  %867 = vst.msk [vmem:[%s1380_s21 + $0x14] sm:$0xf] %vm861_vm1, %v1011_v24 }
 0x11e PF: > { %s13_s12 = sadd.s32 1, %s1205_s12  }
 0x11f   : > { %p10_p4 = scmp.ge.s32.totalorder %s13_s12, 4  }
 0x121   :  { %12 = sbr.rel (!%p10_p4) target bundleno = 1 (0x1), region = 62 }

// kernel: _bottleneck_forward.5
= control target key start
LH: loop header
LB: loop body
LE: loop exit
PB: predicated region body
PF: predicated region fallthrough
CT: control target
= control target key end

     0   :  { %s1259_s15 = smov 0   ;;  %s1436_s0 = inlined_call_operand.vmem [shape: bf16[128,576], index: 0, kind: input, shape index: {}]   ;;  %s1437_s1 = inlined_call_operand.vmem [shape: bf16[576,64], index: 1, kind: input, shape index: {}]   ;;  %s1438_s2 = inlined_call_operand.vmem [shape: f32[1,64], index: 2, kind: input, shape index: {}]   ;;  %s1439_s3 = inlined_call_operand.vmem [shape: f32[1,64], index: 3, kind: input, shape index: {}]   ;;  %s1440_s4 = inlined_call_operand.vmem [shape: bf16[128,64], index: 4, kind: output, shape index: {}]  }
   0x1 LB: > { %s952_s16 = sadd.s32 4294967295, %s1232_s15   ;;  %p956_p0 = scmp.ge.s32.totalorder %s1232_s15, 1  ;;  %s1232_s15 = sphi %s1259_s15, %s14_s15  }
   0x2   : > { %p164_p1 = scmp.lt.s32.totalorder %s1232_s15, 3 }
   0x4   : > { %p165_p2 = pnand %p956_p0, %p164_p1 }
   0x5   : > { %s957_s23 = sshll.u32 (!%p165_p2), %s952_s16, 3 }
   0x6   : > { %168 = sbr.rel (%p165_p2) target bundleno = 286 (0x11e), region = 36  ;;  %p192_p3 = scmp.lt.s32.totalorder (!%p165_p2), %s957_s23, 15 }
   0xb   : > { %v1162_v0 = vld [vmem:[%s1437_s1 + $0x78] sm:$0xff]   ;;  %v1166_v4 = vld [vmem:[%s1437_s1 + $0x70] sm:$0xff]   ;;  %v1170_v8 = vld [vmem:[%s1437_s1 + $0x68] sm:$0xff]   ;;  %s1442_s23 = smov (!%p192_p3, %s957_s23), 15  ;;  %vm617_vm0 = vcmask 523264   ;;  %vm887_vm1 = vcmask 519168  }
   0xc   : > { %v1163_v1 = vld [vmem:[%s1437_s1 + $0xf8] sm:$0xff]   ;;  %1041 = vmatprep.subr.bf16.mxu0 %v1162_v0  ;;  %v1167_v5 = vld [vmem:[%s1437_s1 + $0xf0] sm:$0xff]   ;;  %v1171_v9 = vld [vmem:[%s1437_s1 + $0xe8] sm:$0xff]   ;;  %s1153_s21 = smul.u32 20, %s1442_s23  ;;  %s960_s26 = sshll.u32 %s1442_s23, 2 }
   0xd   : > { %v1164_v2 = vld [vmem:[%s1437_s1 + $0x38] sm:$0xff]   ;;  %1081 = vmatprep.subr.bf16.mxu1 %v1163_v1  ;;  %v1168_v6 = vld [vmem:[%s1437_s1 + $0x30] sm:$0xff]   ;;  %v1172_v10 = vld [vmem:[%s1437_s1 + $0x28] sm:$0xff]   ;;  %s1415_s29 = scalar_lea.vmem %s1440_s4, %s960_s26 }
   0xe   : > { %v1165_v3 = vld [vmem:[%s1437_s1 + $0xb8] sm:$0xff]   ;;  %1042 = vmatpush3.bf16.msra.mxu0 %v1164_v2  ;;  %v1169_v7 = vld [vmem:[%s1437_s1 + $0xb0] sm:$0xff]   ;;  %v1173_v11 = vld [vmem:[%s1437_s1 + $0xa8] sm:$0xff]   ;;  %s1365_s6 = scalar_lea.vmem %s1436_s0, %s1153_s21 }
   0xf   : > { %1082 = vmatpush3.bf16.msra.mxu1 %v1165_v3  ;;  %1043 = vmatprep.subr.bf16.mxu0 %v1166_v4  ;;  %v1174_v12 = vld [vmem:[%s1437_s1 + $0x60] sm:$0xff]   ;;  %v1178_v16 = vld [vmem:[%s1437_s1 + $0x58] sm:$0xff]   ;;  %v1182_v20 = vld [vmem:[%s1437_s1 + $0x50] sm:$0xff]  }
  0x10   : > { %1083 = vmatprep.subr.bf16.mxu1 %v1167_v5  ;;  %v1175_v13 = vld [vmem:[%s1437_s1 + $0xe0] sm:$0xff]   ;;  %v1179_v17 = vld [vmem:[%s1437_s1 + $0xd8] sm:$0xff]   ;;  %v1183_v21 = vld [vmem:[%s1437_s1 + $0xd0] sm:$0xff]  }
  0x11   : > { %v1176_v14 = vld [vmem:[%s1437_s1 + $0x20] sm:$0xff]   ;;  %v1180_v18 = vld [vmem:[%s1437_s1 + $0x18] sm:$0xff]   ;;  %v1184_v22 = vld [vmem:[%s1437_s1 + $0x10] sm:$0xff]  }
  0x12   : > { %1044 = vmatpush3.bf16.msra.mxu0 %v1168_v6  ;;  %v1177_v15 = vld [vmem:[%s1437_s1 + $0xa0] sm:$0xff]   ;;  %v1181_v19 = vld [vmem:[%s1437_s1 + $0x98] sm:$0xff]   ;;  %v1185_v23 = vld [vmem:[%s1437_s1 + $0x90] sm:$0xff]  }
  0x13   : > { %1084 = vmatpush3.bf16.msra.mxu1 %v1169_v7  ;;  %1045 = vmatprep.subr.bf16.mxu0 %v1170_v8  ;;  %v1186_v24 = vld [vmem:[%s1437_s1 + $0x48] sm:$0xff]   ;;  %v1190_v28 = vld [vmem:[%s1437_s1 + $0x40] sm:$0xff]   ;;  %v1200_v36 = vld [vmem:[%s1437_s1 + $0x118] sm:$0xff]  }
  0x14   : > { %1085 = vmatprep.subr.bf16.mxu1 %v1171_v9  ;;  %v1187_v25 = vld [vmem:[%s1437_s1 + $0xc8] sm:$0xff]   ;;  %v1191_v29 = vld [vmem:[%s1437_s1 + $0xc0] sm:$0xff]   ;;  %v1207_v39 = vld [vmem:[%s1437_s1 + $0x110] sm:$0xff]  }
  0x15   : > { %v1188_v26 = vld [vmem:[%s1437_s1 + $0x8] sm:$0xff]   ;;  %v1192_v30 = vld [vmem:[%s1437_s1] sm:$0xff]   ;;  %v1210_v43 = vld [vmem:[%s1365_s6 + $0x5c] ss:$20 sps:$4 sm:$0xff]  }
  0x16   : > { %1046 = vmatpush3.bf16.msra.mxu0 %v1172_v10  ;;  %v1189_v27 = vld [vmem:[%s1437_s1 + $0x88] sm:$0xff]   ;;  %v1193_v31 = vld [vmem:[%s1437_s1 + $0x80] sm:$0xff]   ;;  %v1215_v48 = vld [vmem:[%s1365_s6 + $0x7c] ss:$20 sps:$4 sm:$0xff]  }
  0x17   : > { %1086 = vmatpush3.bf16.msra.mxu1 %v1173_v11  ;;  %1047 = vmatprep.subr.bf16.mxu0 %v1174_v12  ;;  %v1194_v32 = vld [vmem:[%s1365_s6] ss:$20 sps:$4 sm:$0xff]   ;;  %v1196_v33 = vld [vmem:[%s1365_s6 + $0x4] ss:$20 sps:$4 sm:$0xff]   ;;  %v1197_v34 = vld [vmem:[%s1365_s6 + $0x8] ss:$20 sps:$4 sm:$0xff]  }
  0x18   : > { %1087 = vmatprep.subr.bf16.mxu1 %v1175_v13  ;;  %v1199_v35 = vld [vmem:[%s1365_s6 + $0xc] ss:$20 sps:$4 sm:$0xff]   ;;  %662 = vmatprep.mubr.bf16.mxu0 %v1196_v33  ;;  %v1203_v38 = vld [vmem:[%s1365_s6 + $0x34] ss:$20 sps:$4 sm:$0xff]   ;;  %v1206_v41 = vld [vmem:[%s1365_s6 + $0x30] ss:$20 sps:$4 sm:$0xff]  }
  0x19   : > { %727 = vmatprep.mubr.bf16.mxu1 %v1199_v35  ;;  %v1201_v37 = vld [vmem:[%s1365_s6 + $0x2c] ss:$20 sps:$4 sm:$0xff]   ;;  %v1205_v40 = vld [vmem:[%s1365_s6 + $0x28] ss:$20 sps:$4 sm:$0xff]   ;;  %v1212_v46 = vld [vmem:[%s1365_s6 + $0x50] ss:$20 sps:$4 sm:$0xff]  }
  0x1a   : > { %1048 = vmatpush3.bf16.msra.mxu0 %v1176_v14  ;;  %v1208_v42 = vld [vmem:[%s1365_s6 + $0x54] ss:$20 sps:$4 sm:$0xff]   ;;  %v1221_v45 = vld [vmem:[%s1437_s1 + $0x100] sm:$0xff]   ;;  %v1213_v47 = vld [vmem:[%s1365_s6 + $0x58] ss:$20 sps:$4 sm:$0xff]  }
  0x1b   : > { %1088 = vmatpush3.bf16.msra.mxu1 %v1177_v15  ;;  %1049 = vmatprep.subr.bf16.mxu0 %v1178_v16  ;;  %v1214_v44 = vld [vmem:[%s1437_s1 + $0x108] sm:$0xff]   ;;  %v1217_v49 = vld [vmem:[%s1365_s6 + $0x84] ss:$20 sps:$4 sm:$0xff]   ;;  %v1220_v51 = vld [vmem:[%s1365_s6 + $0x80] ss:$20 sps:$4 sm:$0xff]  }
  0x1c   : > { %1089 = vmatprep.subr.bf16.mxu1 %v1179_v17  ;;  %v1219_v50 = vld [vmem:[%s1365_s6 + $0x78] ss:$20 sps:$4 sm:$0xff]   ;;  %v1222_v52 = vld [vmem:[%s1365_s6 + $0x10] ss:$20 sps:$4 sm:$0xff]   ;;  %v1223_v53 = vld [vmem:[%s1365_s6 + $0x60] ss:$20 sps:$4 sm:$0xff]  }
  0x1d   : > { %v1224_v54 = vld [vmem:[%s1365_s6 + $0x38] ss:$20 sps:$4 sm:$0xff]   ;;  %v1225_v55 = vld [vmem:[%s1365_s6 + $0x88] ss:$20 sps:$4 sm:$0xff]  }
  0x1e   : > { %1050 = vmatpush3.bf16.msra.mxu0 %v1180_v18 }
  0x1f   : > { %1090 = vmatpush3.bf16.msra.mxu1 %v1181_v19  ;;  %1051 = vmatprep.subr.bf16.mxu0 %v1182_v20 }
  0x20   : > { %1091 = vmatprep.subr.bf16.mxu1 %v1183_v21 }
  0x22   : > { %1052 = vmatpush3.bf16.msra.mxu0 %v1184_v22 }
  0x23   : > { %1092 = vmatpush3.bf16.msra.mxu1 %v1185_v23  ;;  %1053 = vmatprep.subr.bf16.mxu0 %v1186_v24 }
  0x24   : > { %1093 = vmatprep.subr.bf16.mxu1 %v1187_v25 }
  0x26   : > { %1054 = vmatpush3.bf16.msra.mxu0 %v1188_v26 }
  0x27   : > { %1094 = vmatpush3.bf16.msra.mxu1 %v1189_v27  ;;  %1055 = vmatprep.subr.bf16.mxu0 %v1190_v28 }
  0x28   : > { %1095 = vmatprep.subr.bf16.mxu1 %v1191_v29 }
  0x2a   : > { %1056 = vmatpush3.bf16.msra.mxu0 %v1192_v30 }
  0x2b   : > { %1096 = vmatpush3.bf16.msra.mxu1 %v1193_v31  ;;  %1129 = vmatprep.subr.bf16.mxu0 %v1200_v36 }
  0x2c   : > { %1145 = vmatprep.subr.bf16.mxu1 %v1200_v36 }
  0x2d   : > { %663 = vmatmul.mubr.bf16.vlgmr.msra.gmra.mxu0 %v1194_v32 }
  0x2e   : > { %728 = vmatmul.mubr.bf16.vlgmr.msra.gmra.mxu1 %v1197_v34  ;;  %1130 = vmatpush3.bf16.msra.mxu0 %v1200_v36 }
  0x2f   : > { %1149 = vmatpush3.bf16.msra.mxu1 %v1200_v36  ;;  %670 = vmatprep.mubr.bf16.mxu0 %v1201_v37 }
  0x30   : > { %735 = vmatprep.mubr.bf16.mxu1 %v1203_v38  ;;  %1131 = vmatprep.subr.bf16.mxu0 %v1207_v39  ;;  %v1021_v38 = vld [vmem:[%s1438_s2] ss:$0 sm:$0xff] }
  0x31   : > { %1146 = vmatprep.subr.bf16.mxu1 %v1207_v39 }
  0x32   : > { %1132 = vmatpush3.bf16.msra.mxu0 %v1207_v39 }
  0x33   : > { %1150 = vmatpush3.bf16.msra.mxu1 %v1207_v39  ;;  %1133 = vmatprep.subr.bf16.mxu0 %v1214_v44 }
  0x34   : > { %1147 = vmatprep.subr.bf16.mxu1 %v1214_v44 }
  0x35   : > { %671 = vmatmul.mubr.bf16.gmra.mxu0 %v1205_v40 }
  0x36   : > { %736 = vmatmul.mubr.bf16.gmra.mxu1 %v1206_v41  ;;  %678 = vmatprep.mubr.bf16.mxu0 %v1208_v42 }
  0x37   : > { %743 = vmatprep.mubr.bf16.mxu1 %v1210_v43  ;;  %1134 = vmatpush3.bf16.msra.mxu0 %v1214_v44 }
  0x38   : > { %1151 = vmatpush3.bf16.msra.mxu1 %v1214_v44  ;;  %1135 = vmatprep.subr.bf16.mxu0 %v1221_v45 }
  0x39   : > { %1148 = vmatprep.subr.bf16.mxu1 %v1221_v45 }
  0x3b   : > { %1136 = vmatpush3.bf16.msra.mxu0 %v1221_v45 }
  0x3c   : > { %1152 = vmatpush3.bf16.msra.mxu1 %v1221_v45 }
  0x3d   : > { %679 = vmatmul.mubr.bf16.gmra.mxu0 %v1212_v46 }
  0x3e   : > { %744 = vmatmul.mubr.bf16.gmra.mxu1 %v1213_v47  ;;  %686 = vmatprep.mubr.bf16.mxu0 %v1215_v48  ;;  %v1022_v47 = vld [vmem:[%s1439_s3] ss:$0 sm:$0xff] }
  0x3f   : > { %751 = vmatprep.mubr.bf16.mxu1 %v1217_v49 }
  0x45   : > { %687 = vmatmul.mubr.bf16.gmra.mxu0 %v1219_v50 }
  0x46   : > { %752 = vmatmul.mubr.bf16.gmra.mxu1 %v1220_v51  ;;  %1137 = vmatprep.mubr.msk.bf16.mxu0 %vm617_vm0, %v1222_v52 }
  0x47   : > { %1141 = vmatprep.mubr.msk.bf16.mxu1 %vm617_vm0, %v1223_v53 }
  0x4d   : > { %1138 = vmatmul.mubr.msk.bf16.vlgmr.msra.gmra.mxu0 %vm617_vm0, %v1224_v54 }
  0x4e   : > { %1142 = vmatmul.mubr.msk.bf16.vlgmr.msra.gmra.mxu1 %vm617_vm0, %v1225_v55 }
  0xed   : > { %v1057_v56 = vpop.f32.mrf.mxu0 }
  0xee   : > { %v1097_v57 = vpop.f32.mrf.mxu1 }
  0xef   : > { %v1058_v58 = vpop.f32.mrf.mxu0 }
  0xf0   : > { %v1098_v59 = vpop.f32.mrf.mxu1  ;;  %v1059_v25 = vadd.f32 %v1058_v58, %v1057_v56 }
  0xf1   : > { %v1060_v60 = vpop.f32.mrf.mxu0  ;;  %v1099_v26 = vadd.f32 %v1098_v59, %v1097_v57 }
  0xf2   : > { %v1100_v61 = vpop.f32.mrf.mxu1 }
  0xf3   : > { %v1061_v62 = vpop.f32.mrf.mxu0  ;;  %v730_v44 = vadd.f32 %v1099_v26, %v1059_v25 }
  0xf4   : > { %v1101_v63 = vpop.f32.mrf.mxu1  ;;  %v1062_v40 = vadd.f32 %v1061_v62, %v1060_v60 }
  0xf5   : > { %v1063_v0 = vpop.f32.mrf.mxu0  ;;  %v1102_v41 = vadd.f32 %v1101_v63, %v1100_v61 }
  0xf6   : > { %v1103_v1 = vpop.f32.mrf.mxu1 }
  0xf7   : > { %v1064_v2 = vpop.f32.mrf.mxu0  ;;  %v733_v63 = vadd.f32 %v1102_v41, %v1062_v40 }
  0xf8   : > { %v1104_v3 = vpop.f32.mrf.mxu1  ;;  %v1065_v19 = vadd.f32 %v1064_v2, %v1063_v0 }
  0xf9   : > { %v1066_v4 = vpop.f32.mrf.mxu0  ;;  %v1105_v20 = vadd.f32 %v1104_v3, %v1103_v1 }
  0xfa   : > { %v1106_v5 = vpop.f32.mrf.mxu1 }
  0xfb   : > { %v1067_v6 = vpop.f32.mrf.mxu0  ;;  %v738_v34 = vadd.f32 %v1105_v20, %v1065_v19 }
  0xfc   : > { %v1107_v7 = vpop.f32.mrf.mxu1  ;;  %v1068_v31 = vadd.f32 %v1067_v6, %v1066_v4 }
  0xfd   : > { %v1069_v8 = vpop.f32.mrf.mxu0  ;;  %v1108_v32 = vadd.f32 %v1107_v7, %v1106_v5 }
  0xfe   : > { %v1109_v9 = vpop.f32.mrf.mxu1 }
  0xff   : > { %v1070_v10 = vpop.f32.mrf.mxu0  ;;  %v741_v54 = vadd.f32 %v1108_v32, %v1068_v31 }
 0x100   : > { %v1110_v11 = vpop.f32.mrf.mxu1  ;;  %v1071_v28 = vadd.f32 %v1070_v10, %v1069_v8 }
 0x101   : > { %v1072_v12 = vpop.f32.mrf.mxu0  ;;  %v1111_v29 = vadd.f32 %v1110_v11, %v1109_v9 }
 0x102   : > { %v1112_v13 = vpop.f32.mrf.mxu1 }
 0x103   : > { %v1073_v14 = vpop.f32.mrf.mxu0  ;;  %v746_v50 = vadd.f32 %v1111_v29, %v1071_v28 }
 0x104   : > { %v1113_v15 = vpop.f32.mrf.mxu1  ;;  %v1074_v45 = vadd.f32 %v1073_v14, %v1072_v12 }
 0x105   : > { %v1075_v16 = vpop.f32.mrf.mxu0  ;;  %v1114_v46 = vadd.f32 %v1113_v15, %v1112_v13 }
 0x106   : > { %v1115_v17 = vpop.f32.mrf.mxu1 }
 0x107   : > { %v1076_v18 = vpop.f32.mrf.mxu0  ;;  %v749_v4 = vadd.f32 %v1114_v46, %v1074_v45 }
 0x108   : > { %v1116_v21 = vpop.f32.mrf.mxu1  ;;  %v1077_v22 = vadd.f32 %v1076_v18, %v1075_v16 }
 0x109   : > { %v1117_v23 = vadd.f32 %v1116_v21, %v1115_v17  ;;  %v1078_v24 = vpop.f32.mrf.mxu0 }
 0x10a   : > { %v1118_v27 = vpop.f32.mrf.mxu1 }
 0x10b   : > { %v1079_v30 = vpop.f32.mrf.mxu0  ;;  %v754_v39 = vadd.f32 %v1117_v23, %v1077_v22 }
 0x10c   : > { %v1119_v33 = vpop.f32.mrf.mxu1  ;;  %v1080_v35 = vadd.f32 %v1079_v30, %v1078_v24 }
 0x10d   : > { %v1120_v36 = vadd.f32 %v1119_v33, %v1118_v27  ;;  %v1139_v37 = vpop.f32.mrf.mxu0 }
 0x10e   : > { %v803_v42 = vadd.f32 %v1139_v37, %v738_v34  ;;  %v1143_v43 = vpop.f32.mrf.mxu1 }
 0x10f   : > { %v819_v48 = vadd.f32 %v1143_v43, %v754_v39  ;;  %v794_v49 = vpop.f32.mrf.mxu0  ;;  %v757_v58 = vadd.f32 %v1120_v36, %v1080_v35 }
 0x110   : > { %v834_v51 = vmul.f32 %v1021_v38, %v803_v42  ;;  %v795_v52 = vadd.f32 %v794_v49, %v730_v44  ;;  %v810_v53 = vpop.f32.mrf.mxu1 }
 0x111   : > { %v838_v55 = vmul.f32 %v1021_v38, %v819_v48  ;;  %v811_v56 = vadd.f32 %v810_v53, %v746_v50  ;;  %v1140_v57 = vpop.f32.mrf.mxu0 }
 0x112   : > { %v849_v59 = vadd.f32 %v1022_v47, %v834_v51  ;;  %v832_v60 = vmul.f32 %v1021_v38, %v795_v52  ;;  %v806_v61 = vadd.f32 %v1140_v57, %v741_v54  ;;  %v1144_v62 = vpop.f32.mrf.mxu1 }
 0x113   : > { %v853_v0 = vadd.f32 %v1022_v47, %v838_v55  ;;  %v836_v1 = vmul.f32 %v1021_v38, %v811_v56  ;;  %v822_v2 = vadd.f32 %v1144_v62, %v757_v58  ;;  %v797_v3 = vpop.f32.mrf.mxu0 }
 0x114   : > { %v1035_v5 = vpack.c.bf16 %v849_v59, %v849_v59  ;;  %v847_v6 = vadd.f32 %v1022_v47, %v832_v60  ;;  %v835_v7 = vmul.f32 %v1021_v38, %v806_v61  ;;  %v798_v8 = vadd.f32 %v797_v3, %v733_v63  ;;  %v813_v9 = vpop.f32.mrf.mxu1 }
 0x115   : > { %v1039_v10 = vpack.c.bf16 %v853_v0, %v853_v0  ;;  %v851_v11 = vadd.f32 %v1022_v47, %v836_v1  ;;  %v839_v12 = vmul.f32 %v1021_v38, %v822_v2  ;;  %v814_v13 = vadd.f32 %v813_v9, %v749_v4 }
 0x116   : > { %890 = vst.msk [vmem:[%s1415_s29 + $0x8] sm:$0xf] %vm887_vm1, %v1035_v5  ;;  %v1033_v14 = vpack.c.bf16 %v847_v6, %v847_v6  ;;  %v850_v15 = vadd.f32 %v1022_v47, %v835_v7  ;;  %v833_v16 = vmul.f32 %v1021_v38, %v798_v8 }
 0x117   : > { %894 = vst.msk [vmem:[%s1415_s29 + $0x18] sm:$0xf] %vm887_vm1, %v1039_v10  ;;  %v1037_v17 = vpack.c.bf16 %v851_v11, %v851_v11  ;;  %v854_v18 = vadd.f32 %v1022_v47, %v839_v12  ;;  %v837_v19 = vmul.f32 %v1021_v38, %v814_v13 }
 0x118   : > { %888 = vst.msk [vmem:[%s1415_s29] sm:$0xf] %vm887_vm1, %v1033_v14  ;;  %v1036_v20 = vpack.c.bf16 %v850_v15, %v850_v15  ;;  %v848_v21 = vadd.f32 %v1022_v47, %v833_v16 }
 0x119   : > { %892 = vst.msk [vmem:[%s1415_s29 + $0x10] sm:$0xf] %vm887_vm1, %v1037_v17  ;;  %v1040_v22 = vpack.c.bf16 %v854_v18, %v854_v18  ;;  %v852_v23 = vadd.f32 %v1022_v47, %v837_v19 }
 0x11a   : > { %891 = vst.msk [vmem:[%s1415_s29 + $0xc] sm:$0xf] %vm887_vm1, %v1036_v20  ;;  %v1034_v24 = vpack.c.bf16 %v848_v21, %v848_v21 }
 0x11b   : > { %895 = vst.msk [vmem:[%s1415_s29 + $0x1c] sm:$0xf] %vm887_vm1, %v1040_v22  ;;  %v1038_v25 = vpack.c.bf16 %v852_v23, %v852_v23 }
 0x11c   : > { %889 = vst.msk [vmem:[%s1415_s29 + $0x4] sm:$0xf] %vm887_vm1, %v1034_v24 }
 0x11d   : > { %893 = vst.msk [vmem:[%s1415_s29 + $0x14] sm:$0xf] %vm887_vm1, %v1038_v25 }
 0x11e PF: > { %s14_s15 = sadd.s32 1, %s1232_s15  }
 0x11f   : > { %p11_p4 = scmp.ge.s32.totalorder %s14_s15, 4  }
 0x121   :  { %13 = sbr.rel (!%p11_p4) target bundleno = 1 (0x1), region = 66 }

</bundles_post_ra>
